<compile_context>
chip_gen: v7x
topology: tpu7x:2x2x1
jax: 0.10.0
libtpu: 0.0.40
codegen_flags: <defaults>
</compile_context>

<pallas_src>
import functools

import jax
import jax.numpy as jnp
from jax.experimental import pallas as pl
from jax.experimental.pallas import tpu as pltpu

LAYER_NORM_EPS = 1e-12
HIDDEN_DROPOUT_PROB = 0.1  # unused at inference (dropout == identity)


def _pick_seq_tile(seq_len, cap=512):
    """Largest multiple-of-8 divisor of seq_len that is <= cap (or seq_len itself if small)."""
    if seq_len <= cap:
        return seq_len
    best = None
    for ts in range(8, cap + 1, 8):
        if seq_len % ts == 0:
            best = ts
    if best is None:
        raise ValueError(
            f"seq_len={seq_len} has no multiple-of-8 divisor <= {cap}; pad the sequence "
            f"length instead of silently blowing the VMEM budget.")
    return best


def _embed_kernel(seq_len, seq_tile,            # static (bound via partial)
                  ids_ref,                      # scalar-prefetch (SMEM): flat word ids (B*S,)
                  word_hbm,                     # word table, HBM (pl.ANY)
                  type_ref,                     # type table, resident VMEM (TYPE_V, E)
                  pos_ref,                      # position table, resident VMEM (S, E)
                  tids_ref,                     # token-type ids, VMEM (1, 1, TS, 1) int32
                  gamma_ref, beta_ref,          # LayerNorm affine, VMEM (1, E)
                  out_ref,                      # output block, VMEM (1, TS, E)
                  wbuf, sem):                   # scratch: VMEM (2, TS, E) + DMA sems (2,)
    b = pl.program_id(0)
    ts = pl.program_id(1)
    n_ts = pl.num_programs(1)
    TS = seq_tile
    slot = jax.lax.rem(ts, 2)

    # --- Word-row gather, double-buffered across seq-tile grid steps ---------
    # All TS row copies of a slot signal ONE per-slot semaphore.
    def issue_word_gather(ts_idx, slot_idx):
        base = b * seq_len + ts_idx * TS

        def body(j, carry):
            wid = ids_ref[base + j]
            pltpu.make_async_copy(word_hbm.at[wid], wbuf.at[slot_idx, j],
                                  sem.at[slot_idx]).start()
            return carry

        jax.lax.fori_loop(0, TS, body, None, unroll=min(TS, 8))

    @pl.when(ts == 0)
    def _():
        issue_word_gather(0, 0)                          # prime this batch row

    @pl.when(ts + 1 < n_ts)
    def _():
        issue_word_gather(ts + 1, 1 - slot)              # prefetch next block (same b)

    # Coalesced wait: DMA semaphores accumulate by transfer size, so a single wait whose
    # descriptor covers the whole (TS, E) slab accounts for all TS row copies of this slot.
    pltpu.make_async_copy(word_hbm.at[pl.ds(0, TS)], wbuf.at[slot],
                          sem.at[slot]).wait()

    # --- Sum embeddings -------------------------------------------------------
    word = wbuf[slot].astype(jnp.float32)                          # (TS, E)
    pos_start = pl.multiple_of(ts * TS, TS)
    pos = pos_ref[pl.ds(pos_start, TS), :].astype(jnp.float32)     # (TS, E), resident slab

    tcol = tids_ref[...].reshape(TS, 1)                            # (TS, 1) int32
    type_tab = type_ref[...].astype(jnp.float32)                   # (TYPE_V, E)
    if type_tab.shape[0] == 2:                                     # common BERT case
        t_emb = jnp.where(tcol == 0, type_tab[0:1, :], type_tab[1:2, :])
    else:                                                          # small generic vocab
        t_emb = jnp.zeros((TS, type_tab.shape[1]), jnp.float32)
        for v in range(type_tab.shape[0]):                         # static unroll
            t_emb = t_emb + (tcol == v).astype(jnp.float32) * type_tab[v:v + 1, :]

    x = word + t_emb + pos                                         # (TS, E) f32

    # --- LayerNorm (+ affine). Dropout == identity at inference. -------------
    mean = jnp.mean(x, axis=-1, keepdims=True)
    var = jnp.mean(jnp.square(x - mean), axis=-1, keepdims=True)
    xhat = (x - mean) * jax.lax.rsqrt(var + LAYER_NORM_EPS)
    y = xhat * gamma_ref[...].astype(jnp.float32) + beta_ref[...].astype(jnp.float32)
    out_ref[...] = y.reshape(out_ref.shape).astype(out_ref.dtype)


def embed_forward(input_ids, token_ids, word_table, type_table, pos_table, gamma, beta,
                  *, seq_tile=None, out_dtype=None):
    B, S = input_ids.shape
    word_vocab, E = word_table.shape
    type_vocab = type_table.shape[0]
    pos_vocab = pos_table.shape[0]
    assert pos_vocab >= S, "position vocab must cover the sequence length"
    out_dtype = word_table.dtype if out_dtype is None else jnp.dtype(out_dtype)

    TS = _pick_seq_tile(S) if seq_tile is None else seq_tile
    assert S % TS == 0, "seq_tile must divide S"
    assert TS % 8 == 0 or TS == S, "seq_tile must be a multiple of 8 (or equal S)"
    assert word_vocab >= TS, "coalesced-wait descriptor slices TS rows of the word table"
    n_ts = S // TS

    ids_flat = input_ids.reshape(-1).astype(jnp.int32)
    # (B, n_ts, TS, 1): last two dims equal the full array dims -> always valid tiling,
    # and gives the kernel a (TS, 1) sublane-oriented id column with no relayout.
    tids_blk = token_ids.reshape(B, n_ts, TS, 1).astype(jnp.int32)
    pos_s = pos_table[:S]                       # resident slab covers exactly the sequence

    kernel = functools.partial(_embed_kernel, S, TS)

    # VMEM budget: double-buffered wbuf + out block, resident pos/type, small rest.
    w_it = word_table.dtype.itemsize
    o_it = jnp.dtype(out_dtype).itemsize
    vmem_est = (2 * TS * E * w_it                       # word-row double buffer
                + 2 * TS * E * o_it                     # pipelined output block
                + S * E * pos_table.dtype.itemsize      # resident position slab
                + type_vocab * E * type_table.dtype.itemsize
                + 2 * TS * 4 + 4 * E * 4)               # tids block + gamma/beta
    vmem_limit = int(min(max(2 * vmem_est, 32 * 1024 * 1024), 56 * 1024 * 1024))

    cost = pl.CostEstimate(
        flops=10 * B * S * E,                           # embedding sum + LayerNorm
        transcendentals=B * S,                          # one rsqrt per token
        bytes_accessed=(B * S * E * w_it                # word-row gather reads
                        + S * E * pos_table.dtype.itemsize
                        + type_vocab * E * type_table.dtype.itemsize
                        + 2 * B * S * 4                 # input_ids + token_ids
                        + B * S * E * o_it))            # output writeback

    out = pl.pallas_call(
        kernel,
        out_shape=jax.ShapeDtypeStruct((B, S, E), out_dtype),
        grid_spec=pltpu.PrefetchScalarGridSpec(
            num_scalar_prefetch=1,
            grid=(B, n_ts),
            in_specs=[
                pl.BlockSpec(memory_space=pl.ANY),                              # word table (HBM)
                pl.BlockSpec((type_vocab, E), lambda b, ts, ids: (0, 0)),       # type table, resident
                pl.BlockSpec((S, E), lambda b, ts, ids: (0, 0)),                # position slab, resident
                pl.BlockSpec((1, 1, TS, 1), lambda b, ts, ids: (b, ts, 0, 0)),  # token-type ids
                pl.BlockSpec((1, E), lambda b, ts, ids: (0, 0)),                # gamma
                pl.BlockSpec((1, E), lambda b, ts, ids: (0, 0)),                # beta
            ],
            out_specs=pl.BlockSpec((1, TS, E), lambda b, ts, ids: (b, ts, 0)),
            scratch_shapes=[
                pltpu.VMEM((2, TS, E), word_table.dtype),   # double-buffered word-row gather
                pltpu.SemaphoreType.DMA((2,)),              # one semaphore per buffer slot
            ],
        ),
        compiler_params=pltpu.CompilerParams(
            dimension_semantics=("parallel", "arbitrary"),
            vmem_limit_bytes=vmem_limit),
        cost_estimate=cost,
    )(ids_flat, word_table, type_table, pos_s, tids_blk,
      gamma.reshape(1, E).astype(jnp.float32), beta.reshape(1, E).astype(jnp.float32))
    return out


if __name__ == "__main__":
    # Small, module-consistent shapes (seq_tile=8 -> two seq blocks per batch row, so the
    # cross-step double-buffered, wait-coalesced word gather actually gets exercised).
    B, S, E = 2, 16, 128
    WORD_V, TYPE_V, POS_V = 64, 2, 16

    key = jax.random.PRNGKey(0)
    k1, k2, k3, k4, k5, k6, k7 = jax.random.split(key, 7)

    word_table = jax.random.normal(k1, (WORD_V, E), jnp.float32)
    type_table = jax.random.normal(k2, (TYPE_V, E), jnp.float32)
    pos_table = jax.random.normal(k3, (POS_V, E), jnp.float32)
    gamma = 1.0 + 0.1 * jax.random.normal(k6, (E,), jnp.float32)
    beta = 0.1 * jax.random.normal(k7, (E,), jnp.float32)

    input_ids = jax.random.randint(k4, (B, S), 0, WORD_V, dtype=jnp.int32)
    token_ids = jax.random.randint(k5, (B, S), 0, TYPE_V, dtype=jnp.int32)

    out = embed_forward(input_ids, token_ids, word_table, type_table, pos_table,
                        gamma, beta, seq_tile=8)
    out = jax.block_until_ready(out)

    # Pure-JAX reference (eval mode => dropout is identity).
    pos_ids = jnp.broadcast_to(jnp.arange(S)[None, :], (B, S))
    x = word_table[input_ids] + type_table[token_ids] + pos_table[pos_ids]
    mean = x.mean(-1, keepdims=True)
    var = ((x - mean) ** 2).mean(-1, keepdims=True)
    ref = (x - mean) / jnp.sqrt(var + LAYER_NORM_EPS) * gamma + beta

    assert out.shape == (B, S, E)
    assert jnp.allclose(out, ref, atol=1e-5, rtol=1e-5), "mismatch vs reference"
    print("KERNEL_OK")
</pallas_src>

<mosaic_0001>
module attributes {stable_mosaic.version = 11 : i64} {
  func.func @_embed_kernel(%arg0: i32, %arg1: i32, %arg2: memref<32xi32, #tpu.memory_space<smem>>, %arg3: memref<64x128xf32, #tpu.memory_space<any>>, %arg4: memref<2x128xf32, #tpu.memory_space<vmem>>, %arg5: memref<16x128xf32, #tpu.memory_space<vmem>>, %arg6: memref<1x1x8x1xi32, #tpu.memory_space<vmem>>, %arg7: memref<1x128xf32, #tpu.memory_space<vmem>>, %arg8: memref<1x128xf32, #tpu.memory_space<vmem>>, %arg9: memref<1x8x128xf32, #tpu.memory_space<vmem>>, %arg10: memref<2x8x128xf32, #tpu.memory_space<vmem>>, %arg11: memref<2x!tpu.dma_semaphore, #tpu.memory_space<semaphore_mem>>) attributes {dimension_semantics = [#tpu.dimension_semantics<parallel>, #tpu.dimension_semantics<arbitrary>], iteration_bounds = array<i64: 2, 2>, scalar_prefetch = 1 : i64, scratch_operands = 2 : i64, tpu.core_type = #tpu.core_type<tc>, window_params = [{}, {pipeline_mode = #tpu.pipeline_mode<synchronous>, transform_indices = @transform_1, window_bounds = array<i64: 2, 128>}, {pipeline_mode = #tpu.pipeline_mode<synchronous>, transform_indices = @transform_2, window_bounds = array<i64: 16, 128>}, {transform_indices = @transform_3, window_bounds = array<i64: 1, 1, 8, 1>}, {pipeline_mode = #tpu.pipeline_mode<synchronous>, transform_indices = @transform_4, window_bounds = array<i64: 1, 128>}, {pipeline_mode = #tpu.pipeline_mode<synchronous>, transform_indices = @transform_5, window_bounds = array<i64: 1, 128>}, {transform_indices = @transform_6, window_bounds = array<i64: 1, 8, 128>}]} {
    %c2_i32 = arith.constant 2 : i32
    %0 = arith.remsi %arg1, %c2_i32 : i32
    %c0_i32 = arith.constant 0 : i32
    %1 = arith.cmpi eq, %arg1, %c0_i32 : i32
    %2 = arith.extui %1 : i1 to i32
    %c0_i32_0 = arith.constant 0 : i32
    %3 = arith.cmpi ne, %2, %c0_i32_0 : i32
    scf.if %3 {
      %c16_i32 = arith.constant 16 : i32
      %62 = arith.muli %arg0, %c16_i32 : i32
      %c0_i32_27 = arith.constant 0 : i32
      %63 = arith.addi %62, %c0_i32_27 : i32
      %c0_i32_28 = arith.constant 0 : i32
      %64 = arith.addi %63, %c0_i32_28 : i32
      %65 = arith.index_cast %64 : i32 to index
      %66 = memref.load %arg2[%65] : memref<32xi32, #tpu.memory_space<smem>>
      %c0_i32_29 = arith.constant 0 : i32
      %c0_i32_30 = arith.constant 0 : i32
      %c0_i32_31 = arith.constant 0 : i32
      %67 = tpu.memref_slice %arg3[%66, %c0_i32_31] : memref<64x128xf32, #tpu.memory_space<any>> -> memref<1x128xf32, #tpu.memory_space<any>>
      %68 = tpu.memref_squeeze %67 : memref<1x128xf32, #tpu.memory_space<any>> -> memref<128xf32, #tpu.memory_space<any>>
      %c0_i32_32 = arith.constant 0 : i32
      %69 = tpu.memref_slice %arg10[%c0_i32_29, %c0_i32_28, %c0_i32_32] : memref<2x8x128xf32, #tpu.memory_space<vmem>> -> memref<1x1x128xf32, #tpu.memory_space<vmem>>
      %70 = tpu.memref_squeeze %69 : memref<1x1x128xf32, #tpu.memory_space<vmem>> -> memref<128xf32, #tpu.memory_space<vmem>>
      %71 = tpu.memref_slice %arg11[%c0_i32_30] : memref<2x!tpu.dma_semaphore, #tpu.memory_space<semaphore_mem>> -> memref<1x!tpu.dma_semaphore, #tpu.memory_space<semaphore_mem>>
      %72 = tpu.memref_squeeze %71 : memref<1x!tpu.dma_semaphore, #tpu.memory_space<semaphore_mem>> -> memref<!tpu.dma_semaphore, #tpu.memory_space<semaphore_mem>>
      tpu.enqueue_dma source(%68 : memref<128xf32, #tpu.memory_space<any>>) target(%70 : memref<128xf32, #tpu.memory_space<vmem>>) target_semaphore(%72 : memref<!tpu.dma_semaphore, #tpu.memory_space<semaphore_mem>>)
      %c1_i32_33 = arith.constant 1 : i32
      %73 = arith.addi %63, %c1_i32_33 : i32
      %74 = arith.index_cast %73 : i32 to index
      %75 = memref.load %arg2[%74] : memref<32xi32, #tpu.memory_space<smem>>
      %c0_i32_34 = arith.constant 0 : i32
      %c0_i32_35 = arith.constant 0 : i32
      %c0_i32_36 = arith.constant 0 : i32
      %76 = tpu.memref_slice %arg3[%75, %c0_i32_36] : memref<64x128xf32, #tpu.memory_space<any>> -> memref<1x128xf32, #tpu.memory_space<any>>
      %77 = tpu.memref_squeeze %76 : memref<1x128xf32, #tpu.memory_space<any>> -> memref<128xf32, #tpu.memory_space<any>>
      %c0_i32_37 = arith.constant 0 : i32
      %78 = tpu.memref_slice %arg10[%c0_i32_34, %c1_i32_33, %c0_i32_37] : memref<2x8x128xf32, #tpu.memory_space<vmem>> -> memref<1x1x128xf32, #tpu.memory_space<vmem>>
      %79 = tpu.memref_squeeze %78 : memref<1x1x128xf32, #tpu.memory_space<vmem>> -> memref<128xf32, #tpu.memory_space<vmem>>
      %80 = tpu.memref_slice %arg11[%c0_i32_35] : memref<2x!tpu.dma_semaphore, #tpu.memory_space<semaphore_mem>> -> memref<1x!tpu.dma_semaphore, #tpu.memory_space<semaphore_mem>>
      %81 = tpu.memref_squeeze %80 : memref<1x!tpu.dma_semaphore, #tpu.memory_space<semaphore_mem>> -> memref<!tpu.dma_semaphore, #tpu.memory_space<semaphore_mem>>
      tpu.enqueue_dma source(%77 : memref<128xf32, #tpu.memory_space<any>>) target(%79 : memref<128xf32, #tpu.memory_space<vmem>>) target_semaphore(%81 : memref<!tpu.dma_semaphore, #tpu.memory_space<semaphore_mem>>)
      %c2_i32_38 = arith.constant 2 : i32
      %82 = arith.addi %63, %c2_i32_38 : i32
      %83 = arith.index_cast %82 : i32 to index
      %84 = memref.load %arg2[%83] : memref<32xi32, #tpu.memory_space<smem>>
      %c0_i32_39 = arith.constant 0 : i32
      %c0_i32_40 = arith.constant 0 : i32
      %c0_i32_41 = arith.constant 0 : i32
      %85 = tpu.memref_slice %arg3[%84, %c0_i32_41] : memref<64x128xf32, #tpu.memory_space<any>> -> memref<1x128xf32, #tpu.memory_space<any>>
      %86 = tpu.memref_squeeze %85 : memref<1x128xf32, #tpu.memory_space<any>> -> memref<128xf32, #tpu.memory_space<any>>
      %c0_i32_42 = arith.constant 0 : i32
      %87 = tpu.memref_slice %arg10[%c0_i32_39, %c2_i32_38, %c0_i32_42] : memref<2x8x128xf32, #tpu.memory_space<vmem>> -> memref<1x1x128xf32, #tpu.memory_space<vmem>>
      %88 = tpu.memref_squeeze %87 : memref<1x1x128xf32, #tpu.memory_space<vmem>> -> memref<128xf32, #tpu.memory_space<vmem>>
      %89 = tpu.memref_slice %arg11[%c0_i32_40] : memref<2x!tpu.dma_semaphore, #tpu.memory_space<semaphore_mem>> -> memref<1x!tpu.dma_semaphore, #tpu.memory_space<semaphore_mem>>
      %90 = tpu.memref_squeeze %89 : memref<1x!tpu.dma_semaphore, #tpu.memory_space<semaphore_mem>> -> memref<!tpu.dma_semaphore, #tpu.memory_space<semaphore_mem>>
      tpu.enqueue_dma source(%86 : memref<128xf32, #tpu.memory_space<any>>) target(%88 : memref<128xf32, #tpu.memory_space<vmem>>) target_semaphore(%90 : memref<!tpu.dma_semaphore, #tpu.memory_space<semaphore_mem>>)
      %c3_i32 = arith.constant 3 : i32
      %91 = arith.addi %63, %c3_i32 : i32
      %92 = arith.index_cast %91 : i32 to index
      %93 = memref.load %arg2[%92] : memref<32xi32, #tpu.memory_space<smem>>
      %c0_i32_43 = arith.constant 0 : i32
      %c0_i32_44 = arith.constant 0 : i32
      %c0_i32_45 = arith.constant 0 : i32
      %94 = tpu.memref_slice %arg3[%93, %c0_i32_45] : memref<64x128xf32, #tpu.memory_space<any>> -> memref<1x128xf32, #tpu.memory_space<any>>
      %95 = tpu.memref_squeeze %94 : memref<1x128xf32, #tpu.memory_space<any>> -> memref<128xf32, #tpu.memory_space<any>>
      %c0_i32_46 = arith.constant 0 : i32
      %96 = tpu.memref_slice %arg10[%c0_i32_43, %c3_i32, %c0_i32_46] : memref<2x8x128xf32, #tpu.memory_space<vmem>> -> memref<1x1x128xf32, #tpu.memory_space<vmem>>
      %97 = tpu.memref_squeeze %96 : memref<1x1x128xf32, #tpu.memory_space<vmem>> -> memref<128xf32, #tpu.memory_space<vmem>>
      %98 = tpu.memref_slice %arg11[%c0_i32_44] : memref<2x!tpu.dma_semaphore, #tpu.memory_space<semaphore_mem>> -> memref<1x!tpu.dma_semaphore, #tpu.memory_space<semaphore_mem>>
      %99 = tpu.memref_squeeze %98 : memref<1x!tpu.dma_semaphore, #tpu.memory_space<semaphore_mem>> -> memref<!tpu.dma_semaphore, #tpu.memory_space<semaphore_mem>>
      tpu.enqueue_dma source(%95 : memref<128xf32, #tpu.memory_space<any>>) target(%97 : memref<128xf32, #tpu.memory_space<vmem>>) target_semaphore(%99 : memref<!tpu.dma_semaphore, #tpu.memory_space<semaphore_mem>>)
      %c4_i32 = arith.constant 4 : i32
      %100 = arith.addi %63, %c4_i32 : i32
      %101 = arith.index_cast %100 : i32 to index
      %102 = memref.load %arg2[%101] : memref<32xi32, #tpu.memory_space<smem>>
      %c0_i32_47 = arith.constant 0 : i32
      %c0_i32_48 = arith.constant 0 : i32
      %c0_i32_49 = arith.constant 0 : i32
      %103 = tpu.memref_slice %arg3[%102, %c0_i32_49] : memref<64x128xf32, #tpu.memory_space<any>> -> memref<1x128xf32, #tpu.memory_space<any>>
      %104 = tpu.memref_squeeze %103 : memref<1x128xf32, #tpu.memory_space<any>> -> memref<128xf32, #tpu.memory_space<any>>
      %c0_i32_50 = arith.constant 0 : i32
      %105 = tpu.memref_slice %arg10[%c0_i32_47, %c4_i32, %c0_i32_50] : memref<2x8x128xf32, #tpu.memory_space<vmem>> -> memref<1x1x128xf32, #tpu.memory_space<vmem>>
      %106 = tpu.memref_squeeze %105 : memref<1x1x128xf32, #tpu.memory_space<vmem>> -> memref<128xf32, #tpu.memory_space<vmem>>
      %107 = tpu.memref_slice %arg11[%c0_i32_48] : memref<2x!tpu.dma_semaphore, #tpu.memory_space<semaphore_mem>> -> memref<1x!tpu.dma_semaphore, #tpu.memory_space<semaphore_mem>>
      %108 = tpu.memref_squeeze %107 : memref<1x!tpu.dma_semaphore, #tpu.memory_space<semaphore_mem>> -> memref<!tpu.dma_semaphore, #tpu.memory_space<semaphore_mem>>
      tpu.enqueue_dma source(%104 : memref<128xf32, #tpu.memory_space<any>>) target(%106 : memref<128xf32, #tpu.memory_space<vmem>>) target_semaphore(%108 : memref<!tpu.dma_semaphore, #tpu.memory_space<semaphore_mem>>)
      %c5_i32 = arith.constant 5 : i32
      %109 = arith.addi %63, %c5_i32 : i32
      %110 = arith.index_cast %109 : i32 to index
      %111 = memref.load %arg2[%110] : memref<32xi32, #tpu.memory_space<smem>>
      %c0_i32_51 = arith.constant 0 : i32
      %c0_i32_52 = arith.constant 0 : i32
      %c0_i32_53 = arith.constant 0 : i32
      %112 = tpu.memref_slice %arg3[%111, %c0_i32_53] : memref<64x128xf32, #tpu.memory_space<any>> -> memref<1x128xf32, #tpu.memory_space<any>>
      %113 = tpu.memref_squeeze %112 : memref<1x128xf32, #tpu.memory_space<any>> -> memref<128xf32, #tpu.memory_space<any>>
      %c0_i32_54 = arith.constant 0 : i32
      %114 = tpu.memref_slice %arg10[%c0_i32_51, %c5_i32, %c0_i32_54] : memref<2x8x128xf32, #tpu.memory_space<vmem>> -> memref<1x1x128xf32, #tpu.memory_space<vmem>>
      %115 = tpu.memref_squeeze %114 : memref<1x1x128xf32, #tpu.memory_space<vmem>> -> memref<128xf32, #tpu.memory_space<vmem>>
      %116 = tpu.memref_slice %arg11[%c0_i32_52] : memref<2x!tpu.dma_semaphore, #tpu.memory_space<semaphore_mem>> -> memref<1x!tpu.dma_semaphore, #tpu.memory_space<semaphore_mem>>
      %117 = tpu.memref_squeeze %116 : memref<1x!tpu.dma_semaphore, #tpu.memory_space<semaphore_mem>> -> memref<!tpu.dma_semaphore, #tpu.memory_space<semaphore_mem>>
      tpu.enqueue_dma source(%113 : memref<128xf32, #tpu.memory_space<any>>) target(%115 : memref<128xf32, #tpu.memory_space<vmem>>) target_semaphore(%117 : memref<!tpu.dma_semaphore, #tpu.memory_space<semaphore_mem>>)
      %c6_i32 = arith.constant 6 : i32
      %118 = arith.addi %63, %c6_i32 : i32
      %119 = arith.index_cast %118 : i32 to index
      %120 = memref.load %arg2[%119] : memref<32xi32, #tpu.memory_space<smem>>
      %c0_i32_55 = arith.constant 0 : i32
      %c0_i32_56 = arith.constant 0 : i32
      %c0_i32_57 = arith.constant 0 : i32
      %121 = tpu.memref_slice %arg3[%120, %c0_i32_57] : memref<64x128xf32, #tpu.memory_space<any>> -> memref<1x128xf32, #tpu.memory_space<any>>
      %122 = tpu.memref_squeeze %121 : memref<1x128xf32, #tpu.memory_space<any>> -> memref<128xf32, #tpu.memory_space<any>>
      %c0_i32_58 = arith.constant 0 : i32
      %123 = tpu.memref_slice %arg10[%c0_i32_55, %c6_i32, %c0_i32_58] : memref<2x8x128xf32, #tpu.memory_space<vmem>> -> memref<1x1x128xf32, #tpu.memory_space<vmem>>
      %124 = tpu.memref_squeeze %123 : memref<1x1x128xf32, #tpu.memory_space<vmem>> -> memref<128xf32, #tpu.memory_space<vmem>>
      %125 = tpu.memref_slice %arg11[%c0_i32_56] : memref<2x!tpu.dma_semaphore, #tpu.memory_space<semaphore_mem>> -> memref<1x!tpu.dma_semaphore, #tpu.memory_space<semaphore_mem>>
      %126 = tpu.memref_squeeze %125 : memref<1x!tpu.dma_semaphore, #tpu.memory_space<semaphore_mem>> -> memref<!tpu.dma_semaphore, #tpu.memory_space<semaphore_mem>>
      tpu.enqueue_dma source(%122 : memref<128xf32, #tpu.memory_space<any>>) target(%124 : memref<128xf32, #tpu.memory_space<vmem>>) target_semaphore(%126 : memref<!tpu.dma_semaphore, #tpu.memory_space<semaphore_mem>>)
      %c7_i32 = arith.constant 7 : i32
      %127 = arith.addi %63, %c7_i32 : i32
      %128 = arith.index_cast %127 : i32 to index
      %129 = memref.load %arg2[%128] : memref<32xi32, #tpu.memory_space<smem>>
      %c0_i32_59 = arith.constant 0 : i32
      %c0_i32_60 = arith.constant 0 : i32
      %c0_i32_61 = arith.constant 0 : i32
      %130 = tpu.memref_slice %arg3[%129, %c0_i32_61] : memref<64x128xf32, #tpu.memory_space<any>> -> memref<1x128xf32, #tpu.memory_space<any>>
      %131 = tpu.memref_squeeze %130 : memref<1x128xf32, #tpu.memory_space<any>> -> memref<128xf32, #tpu.memory_space<any>>
      %c0_i32_62 = arith.constant 0 : i32
      %132 = tpu.memref_slice %arg10[%c0_i32_59, %c7_i32, %c0_i32_62] : memref<2x8x128xf32, #tpu.memory_space<vmem>> -> memref<1x1x128xf32, #tpu.memory_space<vmem>>
      %133 = tpu.memref_squeeze %132 : memref<1x1x128xf32, #tpu.memory_space<vmem>> -> memref<128xf32, #tpu.memory_space<vmem>>
      %134 = tpu.memref_slice %arg11[%c0_i32_60] : memref<2x!tpu.dma_semaphore, #tpu.memory_space<semaphore_mem>> -> memref<1x!tpu.dma_semaphore, #tpu.memory_space<semaphore_mem>>
      %135 = tpu.memref_squeeze %134 : memref<1x!tpu.dma_semaphore, #tpu.memory_space<semaphore_mem>> -> memref<!tpu.dma_semaphore, #tpu.memory_space<semaphore_mem>>
      tpu.enqueue_dma source(%131 : memref<128xf32, #tpu.memory_space<any>>) target(%133 : memref<128xf32, #tpu.memory_space<vmem>>) target_semaphore(%135 : memref<!tpu.dma_semaphore, #tpu.memory_space<semaphore_mem>>)
      %c8_i32_63 = arith.constant 8 : i32
    } else {
    }
    %c1_i32 = arith.constant 1 : i32
    %4 = arith.addi %arg1, %c1_i32 : i32
    %c2_i32_1 = arith.constant 2 : i32
    %5 = arith.cmpi slt, %4, %c2_i32_1 : i32
    %6 = arith.extui %5 : i1 to i32
    %c0_i32_2 = arith.constant 0 : i32
    %7 = arith.cmpi ne, %6, %c0_i32_2 : i32
    scf.if %7 {
      %c1_i32_27 = arith.constant 1 : i32
      %62 = arith.addi %arg1, %c1_i32_27 : i32
      %c1_i32_28 = arith.constant 1 : i32
      %63 = arith.subi %c1_i32_28, %0 : i32
      %c16_i32 = arith.constant 16 : i32
      %64 = arith.muli %arg0, %c16_i32 : i32
      %c8_i32_29 = arith.constant 8 : i32
      %65 = arith.muli %62, %c8_i32_29 : i32
      %66 = arith.addi %64, %65 : i32
      %c0_i32_30 = arith.constant 0 : i32
      %67 = arith.addi %66, %c0_i32_30 : i32
      %68 = arith.index_cast %67 : i32 to index
      %69 = memref.load %arg2[%68] : memref<32xi32, #tpu.memory_space<smem>>
      %c0_i32_31 = arith.constant 0 : i32
      %70 = tpu.memref_slice %arg3[%69, %c0_i32_31] : memref<64x128xf32, #tpu.memory_space<any>> -> memref<1x128xf32, #tpu.memory_space<any>>
      %71 = tpu.memref_squeeze %70 : memref<1x128xf32, #tpu.memory_space<any>> -> memref<128xf32, #tpu.memory_space<any>>
      %c0_i32_32 = arith.constant 0 : i32
      %72 = tpu.memref_slice %arg10[%63, %c0_i32_30, %c0_i32_32] : memref<2x8x128xf32, #tpu.memory_space<vmem>> -> memref<1x1x128xf32, #tpu.memory_space<vmem>>
      %73 = tpu.memref_squeeze %72 : memref<1x1x128xf32, #tpu.memory_space<vmem>> -> memref<128xf32, #tpu.memory_space<vmem>>
      %74 = tpu.memref_slice %arg11[%63] : memref<2x!tpu.dma_semaphore, #tpu.memory_space<semaphore_mem>> -> memref<1x!tpu.dma_semaphore, #tpu.memory_space<semaphore_mem>>
      %75 = tpu.memref_squeeze %74 : memref<1x!tpu.dma_semaphore, #tpu.memory_space<semaphore_mem>> -> memref<!tpu.dma_semaphore, #tpu.memory_space<semaphore_mem>>
      tpu.enqueue_dma source(%71 : memref<128xf32, #tpu.memory_space<any>>) target(%73 : memref<128xf32, #tpu.memory_space<vmem>>) target_semaphore(%75 : memref<!tpu.dma_semaphore, #tpu.memory_space<semaphore_mem>>)
      %c1_i32_33 = arith.constant 1 : i32
      %76 = arith.addi %66, %c1_i32_33 : i32
      %77 = arith.index_cast %76 : i32 to index
      %78 = memref.load %arg2[%77] : memref<32xi32, #tpu.memory_space<smem>>
      %c0_i32_34 = arith.constant 0 : i32
      %79 = tpu.memref_slice %arg3[%78, %c0_i32_34] : memref<64x128xf32, #tpu.memory_space<any>> -> memref<1x128xf32, #tpu.memory_space<any>>
      %80 = tpu.memref_squeeze %79 : memref<1x128xf32, #tpu.memory_space<any>> -> memref<128xf32, #tpu.memory_space<any>>
      %c0_i32_35 = arith.constant 0 : i32
      %81 = tpu.memref_slice %arg10[%63, %c1_i32_33, %c0_i32_35] : memref<2x8x128xf32, #tpu.memory_space<vmem>> -> memref<1x1x128xf32, #tpu.memory_space<vmem>>
      %82 = tpu.memref_squeeze %81 : memref<1x1x128xf32, #tpu.memory_space<vmem>> -> memref<128xf32, #tpu.memory_space<vmem>>
      %83 = tpu.memref_slice %arg11[%63] : memref<2x!tpu.dma_semaphore, #tpu.memory_space<semaphore_mem>> -> memref<1x!tpu.dma_semaphore, #tpu.memory_space<semaphore_mem>>
      %84 = tpu.memref_squeeze %83 : memref<1x!tpu.dma_semaphore, #tpu.memory_space<semaphore_mem>> -> memref<!tpu.dma_semaphore, #tpu.memory_space<semaphore_mem>>
      tpu.enqueue_dma source(%80 : memref<128xf32, #tpu.memory_space<any>>) target(%82 : memref<128xf32, #tpu.memory_space<vmem>>) target_semaphore(%84 : memref<!tpu.dma_semaphore, #tpu.memory_space<semaphore_mem>>)
      %c2_i32_36 = arith.constant 2 : i32
      %85 = arith.addi %66, %c2_i32_36 : i32
      %86 = arith.index_cast %85 : i32 to index
      %87 = memref.load %arg2[%86] : memref<32xi32, #tpu.memory_space<smem>>
      %c0_i32_37 = arith.constant 0 : i32
      %88 = tpu.memref_slice %arg3[%87, %c0_i32_37] : memref<64x128xf32, #tpu.memory_space<any>> -> memref<1x128xf32, #tpu.memory_space<any>>
      %89 = tpu.memref_squeeze %88 : memref<1x128xf32, #tpu.memory_space<any>> -> memref<128xf32, #tpu.memory_space<any>>
      %c0_i32_38 = arith.constant 0 : i32
      %90 = tpu.memref_slice %arg10[%63, %c2_i32_36, %c0_i32_38] : memref<2x8x128xf32, #tpu.memory_space<vmem>> -> memref<1x1x128xf32, #tpu.memory_space<vmem>>
      %91 = tpu.memref_squeeze %90 : memref<1x1x128xf32, #tpu.memory_space<vmem>> -> memref<128xf32, #tpu.memory_space<vmem>>
      %92 = tpu.memref_slice %arg11[%63] : memref<2x!tpu.dma_semaphore, #tpu.memory_space<semaphore_mem>> -> memref<1x!tpu.dma_semaphore, #tpu.memory_space<semaphore_mem>>
      %93 = tpu.memref_squeeze %92 : memref<1x!tpu.dma_semaphore, #tpu.memory_space<semaphore_mem>> -> memref<!tpu.dma_semaphore, #tpu.memory_space<semaphore_mem>>
      tpu.enqueue_dma source(%89 : memref<128xf32, #tpu.memory_space<any>>) target(%91 : memref<128xf32, #tpu.memory_space<vmem>>) target_semaphore(%93 : memref<!tpu.dma_semaphore, #tpu.memory_space<semaphore_mem>>)
      %c3_i32 = arith.constant 3 : i32
      %94 = arith.addi %66, %c3_i32 : i32
      %95 = arith.index_cast %94 : i32 to index
      %96 = memref.load %arg2[%95] : memref<32xi32, #tpu.memory_space<smem>>
      %c0_i32_39 = arith.constant 0 : i32
      %97 = tpu.memref_slice %arg3[%96, %c0_i32_39] : memref<64x128xf32, #tpu.memory_space<any>> -> memref<1x128xf32, #tpu.memory_space<any>>
      %98 = tpu.memref_squeeze %97 : memref<1x128xf32, #tpu.memory_space<any>> -> memref<128xf32, #tpu.memory_space<any>>
      %c0_i32_40 = arith.constant 0 : i32
      %99 = tpu.memref_slice %arg10[%63, %c3_i32, %c0_i32_40] : memref<2x8x128xf32, #tpu.memory_space<vmem>> -> memref<1x1x128xf32, #tpu.memory_space<vmem>>
      %100 = tpu.memref_squeeze %99 : memref<1x1x128xf32, #tpu.memory_space<vmem>> -> memref<128xf32, #tpu.memory_space<vmem>>
      %101 = tpu.memref_slice %arg11[%63] : memref<2x!tpu.dma_semaphore, #tpu.memory_space<semaphore_mem>> -> memref<1x!tpu.dma_semaphore, #tpu.memory_space<semaphore_mem>>
      %102 = tpu.memref_squeeze %101 : memref<1x!tpu.dma_semaphore, #tpu.memory_space<semaphore_mem>> -> memref<!tpu.dma_semaphore, #tpu.memory_space<semaphore_mem>>
      tpu.enqueue_dma source(%98 : memref<128xf32, #tpu.memory_space<any>>) target(%100 : memref<128xf32, #tpu.memory_space<vmem>>) target_semaphore(%102 : memref<!tpu.dma_semaphore, #tpu.memory_space<semaphore_mem>>)
      %c4_i32 = arith.constant 4 : i32
      %103 = arith.addi %66, %c4_i32 : i32
      %104 = arith.index_cast %103 : i32 to index
      %105 = memref.load %arg2[%104] : memref<32xi32, #tpu.memory_space<smem>>
      %c0_i32_41 = arith.constant 0 : i32
      %106 = tpu.memref_slice %arg3[%105, %c0_i32_41] : memref<64x128xf32, #tpu.memory_space<any>> -> memref<1x128xf32, #tpu.memory_space<any>>
      %107 = tpu.memref_squeeze %106 : memref<1x128xf32, #tpu.memory_space<any>> -> memref<128xf32, #tpu.memory_space<any>>
      %c0_i32_42 = arith.constant 0 : i32
      %108 = tpu.memref_slice %arg10[%63, %c4_i32, %c0_i32_42] : memref<2x8x128xf32, #tpu.memory_space<vmem>> -> memref<1x1x128xf32, #tpu.memory_space<vmem>>
      %109 = tpu.memref_squeeze %108 : memref<1x1x128xf32, #tpu.memory_space<vmem>> -> memref<128xf32, #tpu.memory_space<vmem>>
      %110 = tpu.memref_slice %arg11[%63] : memref<2x!tpu.dma_semaphore, #tpu.memory_space<semaphore_mem>> -> memref<1x!tpu.dma_semaphore, #tpu.memory_space<semaphore_mem>>
      %111 = tpu.memref_squeeze %110 : memref<1x!tpu.dma_semaphore, #tpu.memory_space<semaphore_mem>> -> memref<!tpu.dma_semaphore, #tpu.memory_space<semaphore_mem>>
      tpu.enqueue_dma source(%107 : memref<128xf32, #tpu.memory_space<any>>) target(%109 : memref<128xf32, #tpu.memory_space<vmem>>) target_semaphore(%111 : memref<!tpu.dma_semaphore, #tpu.memory_space<semaphore_mem>>)
      %c5_i32 = arith.constant 5 : i32
      %112 = arith.addi %66, %c5_i32 : i32
      %113 = arith.index_cast %112 : i32 to index
      %114 = memref.load %arg2[%113] : memref<32xi32, #tpu.memory_space<smem>>
      %c0_i32_43 = arith.constant 0 : i32
      %115 = tpu.memref_slice %arg3[%114, %c0_i32_43] : memref<64x128xf32, #tpu.memory_space<any>> -> memref<1x128xf32, #tpu.memory_space<any>>
      %116 = tpu.memref_squeeze %115 : memref<1x128xf32, #tpu.memory_space<any>> -> memref<128xf32, #tpu.memory_space<any>>
      %c0_i32_44 = arith.constant 0 : i32
      %117 = tpu.memref_slice %arg10[%63, %c5_i32, %c0_i32_44] : memref<2x8x128xf32, #tpu.memory_space<vmem>> -> memref<1x1x128xf32, #tpu.memory_space<vmem>>
      %118 = tpu.memref_squeeze %117 : memref<1x1x128xf32, #tpu.memory_space<vmem>> -> memref<128xf32, #tpu.memory_space<vmem>>
      %119 = tpu.memref_slice %arg11[%63] : memref<2x!tpu.dma_semaphore, #tpu.memory_space<semaphore_mem>> -> memref<1x!tpu.dma_semaphore, #tpu.memory_space<semaphore_mem>>
      %120 = tpu.memref_squeeze %119 : memref<1x!tpu.dma_semaphore, #tpu.memory_space<semaphore_mem>> -> memref<!tpu.dma_semaphore, #tpu.memory_space<semaphore_mem>>
      tpu.enqueue_dma source(%116 : memref<128xf32, #tpu.memory_space<any>>) target(%118 : memref<128xf32, #tpu.memory_space<vmem>>) target_semaphore(%120 : memref<!tpu.dma_semaphore, #tpu.memory_space<semaphore_mem>>)
      %c6_i32 = arith.constant 6 : i32
      %121 = arith.addi %66, %c6_i32 : i32
      %122 = arith.index_cast %121 : i32 to index
      %123 = memref.load %arg2[%122] : memref<32xi32, #tpu.memory_space<smem>>
      %c0_i32_45 = arith.constant 0 : i32
      %124 = tpu.memref_slice %arg3[%123, %c0_i32_45] : memref<64x128xf32, #tpu.memory_space<any>> -> memref<1x128xf32, #tpu.memory_space<any>>
      %125 = tpu.memref_squeeze %124 : memref<1x128xf32, #tpu.memory_space<any>> -> memref<128xf32, #tpu.memory_space<any>>
      %c0_i32_46 = arith.constant 0 : i32
      %126 = tpu.memref_slice %arg10[%63, %c6_i32, %c0_i32_46] : memref<2x8x128xf32, #tpu.memory_space<vmem>> -> memref<1x1x128xf32, #tpu.memory_space<vmem>>
      %127 = tpu.memref_squeeze %126 : memref<1x1x128xf32, #tpu.memory_space<vmem>> -> memref<128xf32, #tpu.memory_space<vmem>>
      %128 = tpu.memref_slice %arg11[%63] : memref<2x!tpu.dma_semaphore, #tpu.memory_space<semaphore_mem>> -> memref<1x!tpu.dma_semaphore, #tpu.memory_space<semaphore_mem>>
      %129 = tpu.memref_squeeze %128 : memref<1x!tpu.dma_semaphore, #tpu.memory_space<semaphore_mem>> -> memref<!tpu.dma_semaphore, #tpu.memory_space<semaphore_mem>>
      tpu.enqueue_dma source(%125 : memref<128xf32, #tpu.memory_space<any>>) target(%127 : memref<128xf32, #tpu.memory_space<vmem>>) target_semaphore(%129 : memref<!tpu.dma_semaphore, #tpu.memory_space<semaphore_mem>>)
      %c7_i32 = arith.constant 7 : i32
      %130 = arith.addi %66, %c7_i32 : i32
      %131 = arith.index_cast %130 : i32 to index
      %132 = memref.load %arg2[%131] : memref<32xi32, #tpu.memory_space<smem>>
      %c0_i32_47 = arith.constant 0 : i32
      %133 = tpu.memref_slice %arg3[%132, %c0_i32_47] : memref<64x128xf32, #tpu.memory_space<any>> -> memref<1x128xf32, #tpu.memory_space<any>>
      %134 = tpu.memref_squeeze %133 : memref<1x128xf32, #tpu.memory_space<any>> -> memref<128xf32, #tpu.memory_space<any>>
      %c0_i32_48 = arith.constant 0 : i32
      %135 = tpu.memref_slice %arg10[%63, %c7_i32, %c0_i32_48] : memref<2x8x128xf32, #tpu.memory_space<vmem>> -> memref<1x1x128xf32, #tpu.memory_space<vmem>>
      %136 = tpu.memref_squeeze %135 : memref<1x1x128xf32, #tpu.memory_space<vmem>> -> memref<128xf32, #tpu.memory_space<vmem>>
      %137 = tpu.memref_slice %arg11[%63] : memref<2x!tpu.dma_semaphore, #tpu.memory_space<semaphore_mem>> -> memref<1x!tpu.dma_semaphore, #tpu.memory_space<semaphore_mem>>
      %138 = tpu.memref_squeeze %137 : memref<1x!tpu.dma_semaphore, #tpu.memory_space<semaphore_mem>> -> memref<!tpu.dma_semaphore, #tpu.memory_space<semaphore_mem>>
      tpu.enqueue_dma source(%134 : memref<128xf32, #tpu.memory_space<any>>) target(%136 : memref<128xf32, #tpu.memory_space<vmem>>) target_semaphore(%138 : memref<!tpu.dma_semaphore, #tpu.memory_space<semaphore_mem>>)
      %c8_i32_49 = arith.constant 8 : i32
    } else {
    }
    %c0_i32_3 = arith.constant 0 : i32
    %c0_i32_4 = arith.constant 0 : i32
    %8 = tpu.memref_slice %arg3[%c0_i32_3, %c0_i32_4] : memref<64x128xf32, #tpu.memory_space<any>> -> memref<8x128xf32, #tpu.memory_space<any>>
    %c0_i32_5 = arith.constant 0 : i32
    %c0_i32_6 = arith.constant 0 : i32
    %9 = tpu.memref_slice %arg10[%0, %c0_i32_5, %c0_i32_6] : memref<2x8x128xf32, #tpu.memory_space<vmem>> -> memref<1x8x128xf32, #tpu.memory_space<vmem>>
    %10 = tpu.memref_squeeze %9 : memref<1x8x128xf32, #tpu.memory_space<vmem>> -> memref<8x128xf32, #tpu.memory_space<vmem>>
    %11 = tpu.memref_slice %arg11[%0] : memref<2x!tpu.dma_semaphore, #tpu.memory_space<semaphore_mem>> -> memref<1x!tpu.dma_semaphore, #tpu.memory_space<semaphore_mem>>
    %12 = tpu.memref_squeeze %11 : memref<1x!tpu.dma_semaphore, #tpu.memory_space<semaphore_mem>> -> memref<!tpu.dma_semaphore, #tpu.memory_space<semaphore_mem>>
    tpu.wait_dma2 semaphore(%12 : memref<!tpu.dma_semaphore, #tpu.memory_space<semaphore_mem>>) src(%8 : memref<8x128xf32, #tpu.memory_space<any>>) dst(%10 : memref<8x128xf32, #tpu.memory_space<vmem>>)
    %13 = arith.index_cast %0 : i32 to index
    %c0 = arith.constant 0 : index
    %c0_7 = arith.constant 0 : index
    %14 = vector.load %arg10[%13, %c0, %c0_7] : memref<2x8x128xf32, #tpu.memory_space<vmem>>, vector<1x8x128xf32>
    %15 = vector.shape_cast %14 : vector<1x8x128xf32> to vector<8x128xf32>
    %c8_i32 = arith.constant 8 : i32
    %16 = arith.muli %arg1, %c8_i32 : i32
    %17 = tpu.assume_multiple %16, 8 : i32
    %18 = arith.index_cast %17 : i32 to index
    %c0_8 = arith.constant 0 : index
    %19 = vector.load %arg5[%18, %c0_8] : memref<16x128xf32, #tpu.memory_space<vmem>>, vector<8x128xf32>
    %c0_9 = arith.constant 0 : index
    %c0_10 = arith.constant 0 : index
    %c0_11 = arith.constant 0 : index
    %c0_12 = arith.constant 0 : index
    %20 = vector.load %arg6[%c0_9, %c0_10, %c0_11, %c0_12] : memref<1x1x8x1xi32, #tpu.memory_space<vmem>>, vector<1x1x8x1xi32>
    %21 = vector.shape_cast %20 : vector<1x1x8x1xi32> to vector<8x1xi32>
    %c0_13 = arith.constant 0 : index
    %c0_14 = arith.constant 0 : index
    %22 = vector.load %arg4[%c0_13, %c0_14] : memref<2x128xf32, #tpu.memory_space<vmem>>, vector<2x128xf32>
    %c0_i32_15 = arith.constant 0 : i32
    %23 = vector.broadcast %c0_i32_15 : i32 to vector<8x1xi32>
    %24 = arith.cmpi eq, %21, %23 : vector<8x1xi32>
    %25 = vector.extract_strided_slice %22 {offsets = [0, 0], sizes = [1, 128], strides = [1, 1]} : vector<2x128xf32> to vector<1x128xf32>
    %26 = vector.extract_strided_slice %22 {offsets = [1, 0], sizes = [1, 128], strides = [1, 1]} : vector<2x128xf32> to vector<1x128xf32>
    %27 = vector.shape_cast %24 : vector<8x1xi1> to vector<8x1xi1>
    %28 = vector.broadcast %27 : vector<8x1xi1> to vector<8x128xi1>
    %29 = vector.shape_cast %25 : vector<1x128xf32> to vector<1x128xf32>
    %30 = vector.broadcast %29 : vector<1x128xf32> to vector<8x128xf32>
    %31 = vector.shape_cast %26 : vector<1x128xf32> to vector<1x128xf32>
    %32 = vector.broadcast %31 : vector<1x128xf32> to vector<8x128xf32>
    %33 = arith.select %28, %30, %32 : vector<8x128xi1>, vector<8x128xf32>
    %34 = arith.addf %15, %33 : vector<8x128xf32>
    %35 = arith.addf %34, %19 : vector<8x128xf32>
    %cst = arith.constant dense<0.000000e+00> : vector<8xf32>
    %36 = vector.multi_reduction <add>, %35, %cst [1] : vector<8x128xf32> to vector<8xf32>
    %37 = vector.shape_cast %36 : vector<8xf32> to vector<8x1xf32>
    %cst_16 = arith.constant 1.280000e+02 : f32
    %38 = vector.broadcast %cst_16 : f32 to vector<8x1xf32>
    %39 = arith.divf %37, %38 : vector<8x1xf32>
    %40 = vector.broadcast %39 : vector<8x1xf32> to vector<8x128xf32>
    %41 = arith.subf %35, %40 : vector<8x128xf32>
    %42 = arith.mulf %41, %41 : vector<8x128xf32>
    %cst_17 = arith.constant dense<0.000000e+00> : vector<8xf32>
    %43 = vector.multi_reduction <add>, %42, %cst_17 [1] : vector<8x128xf32> to vector<8xf32>
    %44 = vector.shape_cast %43 : vector<8xf32> to vector<8x1xf32>
    %cst_18 = arith.constant 1.280000e+02 : f32
    %45 = vector.broadcast %cst_18 : f32 to vector<8x1xf32>
    %46 = arith.divf %44, %45 : vector<8x1xf32>
    %47 = vector.broadcast %39 : vector<8x1xf32> to vector<8x128xf32>
    %48 = arith.subf %35, %47 : vector<8x128xf32>
    %cst_19 = arith.constant 9.99999996E-13 : f32
    %49 = vector.broadcast %cst_19 : f32 to vector<8x1xf32>
    %50 = arith.addf %46, %49 : vector<8x1xf32>
    %51 = math.rsqrt %50 : vector<8x1xf32>
    %52 = vector.broadcast %51 : vector<8x1xf32> to vector<8x128xf32>
    %53 = arith.mulf %48, %52 : vector<8x128xf32>
    %c0_20 = arith.constant 0 : index
    %c0_21 = arith.constant 0 : index
    %54 = vector.load %arg7[%c0_20, %c0_21] : memref<1x128xf32, #tpu.memory_space<vmem>>, vector<1x128xf32>
    %55 = vector.broadcast %54 : vector<1x128xf32> to vector<8x128xf32>
    %56 = arith.mulf %53, %55 : vector<8x128xf32>
    %c0_22 = arith.constant 0 : index
    %c0_23 = arith.constant 0 : index
    %57 = vector.load %arg8[%c0_22, %c0_23] : memref<1x128xf32, #tpu.memory_space<vmem>>, vector<1x128xf32>
    %58 = vector.broadcast %57 : vector<1x128xf32> to vector<8x128xf32>
    %59 = arith.addf %56, %58 : vector<8x128xf32>
    %60 = vector.shape_cast %59 : vector<8x128xf32> to vector<1x8x128xf32>
    %c0_24 = arith.constant 0 : index
    %c0_25 = arith.constant 0 : index
    %c0_26 = arith.constant 0 : index
    %61 = vector.load %arg9[%c0_24, %c0_25, %c0_26] : memref<1x8x128xf32, #tpu.memory_space<vmem>>, vector<1x8x128xf32>
    tpu.vector_store %arg9[%c0_24, %c0_25, %c0_26], %60 {strides = array<i32>} : memref<1x8x128xf32, #tpu.memory_space<vmem>>, vector<1x8x128xf32>,
    return
  }
  func.func @transform_1(%arg0: i32, %arg1: i32, %arg2: memref<32xi32, #tpu.memory_space<smem>>) -> (i32, i32) {
    %c0_i32 = arith.constant 0 : i32
    %c0_i32_0 = arith.constant 0 : i32
    %c0_i32_1 = arith.constant 0 : i32
    return %c0_i32, %c0_i32_0 : i32, i32
  }
  func.func @transform_2(%arg0: i32, %arg1: i32, %arg2: memref<32xi32, #tpu.memory_space<smem>>) -> (i32, i32) {
    %c0_i32 = arith.constant 0 : i32
    %c0_i32_0 = arith.constant 0 : i32
    %c0_i32_1 = arith.constant 0 : i32
    return %c0_i32, %c0_i32_0 : i32, i32
  }
  func.func @transform_3(%arg0: i32, %arg1: i32, %arg2: memref<32xi32, #tpu.memory_space<smem>>) -> (i32, i32, i32, i32) {
    %c0_i32 = arith.constant 0 : i32
    %c0_i32_0 = arith.constant 0 : i32
    %c0_i32_1 = arith.constant 0 : i32
    return %arg0, %arg1, %c0_i32, %c0_i32_0 : i32, i32, i32, i32
  }
  func.func @transform_4(%arg0: i32, %arg1: i32, %arg2: memref<32xi32, #tpu.memory_space<smem>>) -> (i32, i32) {
    %c0_i32 = arith.constant 0 : i32
    %c0_i32_0 = arith.constant 0 : i32
    %c0_i32_1 = arith.constant 0 : i32
    return %c0_i32, %c0_i32_0 : i32, i32
  }
  func.func @transform_5(%arg0: i32, %arg1: i32, %arg2: memref<32xi32, #tpu.memory_space<smem>>) -> (i32, i32) {
    %c0_i32 = arith.constant 0 : i32
    %c0_i32_0 = arith.constant 0 : i32
    %c0_i32_1 = arith.constant 0 : i32
    return %c0_i32, %c0_i32_0 : i32, i32
  }
  func.func @transform_6(%arg0: i32, %arg1: i32, %arg2: memref<32xi32, #tpu.memory_space<smem>>) -> (i32, i32, i32) {
    %c0_i32 = arith.constant 0 : i32
    %c0_i32_0 = arith.constant 0 : i32
    return %arg0, %arg1, %c0_i32 : i32, i32, i32
  }
}

</mosaic_0001>

<bundles_post_ra>
// kernel: tpu_custom_call.1
= control target key start
LH: loop header
LB: loop body
LE: loop exit
PB: predicated region body
PF: predicated region fallthrough
CT: control target
= control target key end

     0   :  { %s2218_s0 = inlined_call_operand.vmem [shape: s32[32], index: 0, kind: input, shape index: {}]   ;;  %s2219_s1 = inlined_call_operand.hbm [shape: f32[64,128], index: 1, kind: input, shape index: {}]   ;;  %s2220_s2 = inlined_call_operand.vmem [shape: f32[2,128], index: 2, kind: input, shape index: {}]   ;;  %s2221_s3 = inlined_call_operand.vmem [shape: f32[16,128], index: 3, kind: input, shape index: {}]   ;;  %s2222_s4 = inlined_call_operand.vmem [shape: s32[2,2,8,1], index: 4, kind: input, shape index: {}]   ;;  %s2223_s5 = inlined_call_operand.vmem [shape: f32[1,128], index: 5, kind: input, shape index: {}]   ;;  %s2224_s6 = inlined_call_operand.vmem [shape: f32[1,128], index: 6, kind: input, shape index: {}]   ;;  %s2225_s7 = inlined_call_operand.hbm [shape: f32[2,16,128], index: 7, kind: output, shape index: {}]  }
   0x1   :  { %2242 = sst [smem:[#allocation71_spill]] %s2222_s4  ;;  %s12_s26 = sshll.u32 %s2218_s0, 4  ;;  %s13_s26 = int_to_ptr.vmem [resolvable:$true] %s12_s26 }
   0x2   :  { %2243 = sst [smem:[#allocation72_spill]] %s2223_s5  ;;  %s951_s27 = scalar_lea.vmem %s13_s26, 16 }
   0x3   :  { %2244 = sst [smem:[#allocation73_spill]] %s2224_s6  ;;  %p952_p0 = scmp.ne.s32.totalorder %s13_s26, %s951_s27 }
   0x4   :  { %2245 = sst [smem:[#allocation74_spill]] %s2225_s7  ;;  %p956_p1 = scmp.lt.s32.totalorder %s13_s26, %s13_s26 }
   0x5   :  { %p957_p2 = scmp.lt.s32.totalorder %s951_s27, %s951_s27 }
   0x7   :  { %p958_p3 = por %p957_p2, %p956_p1 }
   0x9   :  { %p959_p4 = pnand %p958_p3, %p952_p0 }
   0xb   :  { %962 = shalt.err (!%p959_p4)  }
   0xc   :  { %s1511_s28 = smov [#allocation5]  }
   0xd   :  { %15 = dma.vmem_to_smem %s13_s26, 16, %s1511_s28, [#allocation4] }
   0xe   :  { %1471 = dma.done.wait [#allocation4], 16 }
   0xf   :  { %1472 = vsyncadd [#allocation4], 4294967280 }
  0x10   :  { %17 = sfence }
  0x11   :  { %18 = vsyncpa [#allocation7], 0 }
  0x12   :  { %20 = vsyncpa [#allocation7 + $0x1], 0  ;;  %s1565_s29 = smov 0   ;;  %s1567_s30 = smov 0  }
  0x13   :  { %s1569_s0 = smov 0   ;;  %s1571_s8 = smov 0  }
  0x14   :  { %s1573_s9 = smov 0   ;;  %s1575_s10 = smov 0  }
  0x15   :  { %s1577_s11 = smov 0   ;;  %s1579_s12 = smov 0  }
  0x16 LB: > { %2246 = sst [smem:[#allocation61_spill]] %s1481_s29  ;;  %s764_s13 = sadd.s32 4294967295, %s1509_s12   ;;  %s1509_s12 = sphi %s1579_s12, %s26_s12   ;;  %s1505_s11 = sphi %s1577_s11, %s2281_s11   ;;  %s1501_s10 = sphi %s1575_s10, %s2280_s10   ;;  %s1497_s9 = sphi %s1573_s9, %s2279_s9   ;;  %s1493_s8 = sphi %s1571_s8, %s2278_s8   ;;  %s1489_s0 = sphi %s1569_s0, %s2277_s0   ;;  %s1485_s30 = sphi %s1567_s30, %s2283_s30   ;;  %s1481_s29 = sphi %s1565_s29, %s2282_s29  }
  0x17   : > { %2247 = sst [smem:[#allocation62_spill]] %s1489_s0  ;;  %s765_s14 = sadd.s32 4294967294, %s1509_s12  }
  0x18   : > { %2248 = sst [smem:[#allocation63_spill]] %s1501_s10  ;;  %s35_s15 = sadd.s32 1, %s1501_s10 }
  0x19   : > { %2249 = sst [smem:[#allocation64_spill]] %s1505_s11  ;;  %p36_p5 = scmp.ge.s32.totalorder %s35_s15, 2 }
  0x1a   : > { %2250 = sst [smem:[#allocation65_spill]] %s1509_s12  ;;  %s38_s16 = sadd.s32 1, %s1505_s11 }
  0x1b   : > { %p169_p6 = scmp.ne.s32.totalorder %s1489_s0, %s1485_s30  ;;  %p170_p7 = scmp.eq.s32.totalorder %s764_s13, 3 }
  0x1c   : > { %s2285_s15 = smov (%p36_p5, %s35_s15), 0  ;;  %s2287_s16 = smov (!%p36_p5, %s38_s16), %s1505_s11 }
  0x1d   : > { %2251 = sst [smem:[#allocation66_spill]] %s2285_s15  ;;  %s155_s17 = ssub.s32 %s1501_s10, %s2285_s15 }
  0x1e   : > { %p1616_p8 = por %p170_p7, %p169_p6  ;;  %p40_p9 = scmp.ge.s32.totalorder %s2287_s16, 2 }
  0x1f   : > { %p175_p10 = scmp.ne.s32.totalorder %s1485_s30, %s1481_s29  ;;  %p176_p11 = scmp.eq.s32.totalorder %s765_s14, 3 }
  0x20   : > { %s2252_s18 = scalar_select %p1616_p8, 1, 0 }
  0x21   : > { %p768_p12 = scmp.ge.s32.totalorder %s1509_s12, 1  ;;  %s2289_s16 = smov (%p40_p9, %s2287_s16), 0 }
  0x22   : > { %2253 = sst [smem:[#allocation67_spill]] %s2252_s18  ;;  %p1625_p13 = por %p176_p11, %p175_p10 }
  0x23   : > { %2254 = sst [smem:[#allocation68_spill]] %s2289_s16  ;;  %p217_p0 = scmp.lt.s32.totalorder %s1509_s12, 5 }
  0x24   : > { %s2255_s19 = scalar_select %p1625_p13, 1, 0 }
  0x25   : > { %s154_s20 = ssub.s32 %s1505_s11, %s2289_s16  ;;  %s159_s21 = sadd.s32 1, %s1489_s0 }
  0x26   : > { %2256 = sst [smem:[#allocation69_spill]] %s2255_s19  ;;  %s156_s22 = sor.u32 %s155_s17, %s154_s20 }
  0x27   : > { %p218_p1 = pnand %p768_p12, %p217_p0  ;;  %p157_p2 = scmp.eq.s32.totalorder %s156_s22, 0 }
  0x28   : > { %s2226_s24 = sand.u32 (!%p218_p1), 1, %s1485_s30   ;;  %p248_p3 = scmp.lt.s32.totalorder (!%p218_p1), %s1497_s9, 1 }
  0x29   : > { %s1634_s23 = scalar_select %p157_p2, %s1489_s0, %s159_s21  }
  0x2a   : > { %221 = sbr.rel (%p218_p1) target bundleno = 944 (0x3b0), region = 40  ;;  %s1640_s25 = sshll.u32 (!%p218_p1), %s2226_s24, 3 }
  0x2b   : > { %2257 = sst [smem:[#allocation70_spill]] %s1634_s23  ;;  %p250_p4 = scmp.lt.s32.totalorder (!%p218_p1), %s1493_s8, 1 }
  0x2c   : > { %p871_p5 = scmp.eq.s32.totalorder (!%p218_p1), %s1493_s8, 0  ;;  %s1647_s14 = sshll.u32 (!%p218_p1), %s1497_s9, 4 }
  0x2d   : > { %s2258_s4 = sld [smem:[#allocation71_spill]] (!%p218_p1)  ;;  %s1512_s24 = smov (!%p218_p1), [#allocation2]  }
  0x2e   : > { %s277_s16 = sshll.u32 (!%p218_p1), %s1512_s24, 4  ;;  %s1659_s16 = int_to_ptr.vmem [resolvable:$true] %s277_s16 }
  0x31   : > { %s249_s26 = scalar_select %p248_p3, %s1497_s9, 1 }
  0x32   : > { %s251_s27 = scalar_select %p250_p4, %s1493_s8, 1 }
  0x33   : > { %s770_s28 = sshll.u32 %s249_s26, 1 }
  0x34   : > { %s253_s13 = sadd.s32 %s770_s28, %s251_s27  ;;  %s281_s27 = sadd.s32 1, %s1647_s14 }
  0x35   : > { %s771_s17 = sshll.u32 %s253_s13, 3  ;;  %s2291_s27 = smov (!%p871_p5, %s281_s27), 0 }
  0x36   : > { %s1652_s22 = scalar_lea.vmem %s2258_s4, %s771_s17  ;;  %s1513_s13 = smov [#allocation2 + $0x1]  }
  0x37   : > { %s816_s15 = scalar_select %p871_p5, [#allocation5], [#allocation42] }
  0x38   : > { %s817_s26 = scalar_select %p871_p5, %s1647_s14, 0 }
  0x39   : > { %s819_s11 = scalar_select %p871_p5, [#allocation5], [#allocation43] }
  0x3a   : > { %s267_s28 = sld [smem:[%s816_s15 + %s817_s26]]  ;;  %s293_s20 = sshll.u32 %s1513_s13, 4  ;;  %s1669_s20 = int_to_ptr.vmem [resolvable:$true] %s293_s20 }
  0x3b   : > { %s1667_s17 = sld [smem:[%s819_s11 + %s2291_s27]]  ;;  %s1514_s15 = smov [#allocation2 + $0x2]  }
  0x3c   : > { %s1673_s24 = scalar_select %p871_p5, [#allocation5], [#allocation44] }
  0x3d   : > { %s309_s26 = sshll.u32 %s1514_s15, 4  ;;  %s1683_s27 = scalar_lea.hbm %s2219_s1, 1024  ;;  %s1707_s26 = int_to_ptr.vmem [resolvable:$true] %s309_s26 }
  0x40   : > { %s775_s4 = sshll.u32 %s267_s28, 4 }
  0x41   : > { %s269_s0 = scalar_lea.hbm %s2219_s1, %s775_s4 }
  0x42   : > { %s963_s19 = scalar_lea.hbm %s269_s0, 16  ;;  %p968_p10 = scmp.lt.u32.totalorder %s269_s0, %s2219_s1 }
  0x43   : > { %p964_p6 = scmp.ne.s32.totalorder %s269_s0, %s963_s19  ;;  %p969_p11 = scmp.lt.u32.totalorder %s1683_s27, %s963_s19 }
  0x44   : > { %p971_p0 = scmp.lt.u32.totalorder %s963_s19, %s269_s0 }
  0x45   : > { %p965_p7 = pnand %p964_p6, %p871_p5  ;;  %p970_p12 = por %p969_p11, %p968_p10 }
  0x47   : > { %p966_p9 = pneg %p965_p7  ;;  %p972_p1 = por %p971_p0, %p970_p12 }
  0x49   : > { %p973_p2 = pnand %p972_p1, %p966_p9 }
  0x4b   : > { %976 = shalt.err (!%p973_p2)  }
  0x4c   : > { %s977_s4 = scalar_lea.vmem %s1659_s16, 16  ;;  %s1694_s10 = scalar_lea.vmem %s1659_s16, 256 }
  0x4d   : > { %p978_p3 = scmp.ne.s32.totalorder %s1659_s16, %s977_s4  ;;  %p984_p7 = scmp.lt.s32.totalorder %s1659_s16, %s1659_s16 }
  0x4e   : > { %p985_p10 = scmp.lt.s32.totalorder %s1694_s10, %s977_s4 }
  0x4f   : > { %p979_p4 = pnand %p978_p3, %p871_p5 }
  0x50   : > { %p986_p11 = por %p985_p10, %p984_p7 }
  0x51   : > { %p980_p6 = pneg %p979_p4 }
  0x53   : > { %p987_p12 = pnand %p986_p11, %p980_p6 }
  0x55   : > { %990 = shalt.err (!%p987_p12)  }
  0x56   : > { %818 = dma.hbm_to_vmem [thread:$0]  (%p871_p5), %s269_s0, 16, %s1659_s16, [#allocation3] }
  0x57   : > { %s2259_s29 = sadd.s32 2, %s1647_s14  ;;  %s776_s19 = sshll.u32 %s1667_s17, 4 }
  0x58   : > { %s2293_s29 = smov (!%p871_p5, %s2259_s29), 0  ;;  %s284_s21 = scalar_lea.hbm %s2219_s1, %s776_s19 }
  0x59   : > { %s1713_s15 = sld [smem:[%s1673_s24 + %s2293_s29]]  ;;  %s991_s13 = scalar_lea.hbm %s284_s21, 16 }
  0x5a   : > { %p992_p9 = scmp.ne.s32.totalorder %s284_s21, %s991_s13  ;;  %p996_p2 = scmp.lt.u32.totalorder %s284_s21, %s2219_s1 }
  0x5b   : > { %p997_p3 = scmp.lt.u32.totalorder %s1683_s27, %s991_s13  ;;  %p999_p6 = scmp.lt.u32.totalorder %s991_s13, %s284_s21 }
  0x5c   : > { %p993_p0 = pnand %p992_p9, %p871_p5 }
  0x5d   : > { %p998_p4 = por %p997_p3, %p996_p2 }
  0x5e   : > { %p994_p1 = pneg %p993_p0 }
  0x5f   : > { %p1000_p7 = por %p999_p6, %p998_p4 }
  0x61   : > { %p1001_p10 = pnand %p1000_p7, %p994_p1 }
  0x63   : > { %1004 = shalt.err (!%p1001_p10)  }
  0x64   : > { %s1005_s0 = scalar_lea.vmem %s1669_s20, 16  ;;  %p1012_p0 = scmp.lt.s32.totalorder %s1669_s20, %s1659_s16 }
  0x65   : > { %p1006_p11 = scmp.ne.s32.totalorder %s1669_s20, %s1005_s0  ;;  %p1013_p13 = scmp.lt.s32.totalorder %s1694_s10, %s1005_s0 }
  0x67   : > { %p1007_p12 = pnand %p1006_p11, %p871_p5  ;;  %p1014_p8 = por %p1013_p13, %p1012_p0 }
  0x69   : > { %p1008_p9 = pneg %p1007_p12 }
  0x6b   : > { %p1015_p2 = pnand %p1014_p8, %p1008_p9 }
  0x6d   : > { %1018 = shalt.err (!%p1015_p2)  }
  0x6e   : > { %821 = dma.hbm_to_vmem [thread:$0]  (%p871_p5), %s284_s21, 16, %s1669_s20, [#allocation3] }
  0x6f   : > { %s313_s17 = sadd.s32 3, %s1647_s14  ;;  %s1515_s29 = smov [#allocation2 + $0x3]  }
  0x70   : > { %s825_s24 = scalar_select %p871_p5, [#allocation5], [#allocation45] }
  0x71   : > { %s2295_s17 = smov (!%p871_p5, %s313_s17), 0  ;;  %s325_s19 = sshll.u32 %s1515_s29, 4  ;;  %s1743_s19 = int_to_ptr.vmem [resolvable:$true] %s325_s19 }
  0x72   : > { %s329_s23 = sadd.s32 4, %s1647_s14  ;;  %s777_s28 = sshll.u32 %s1713_s15, 4 }
  0x73   : > { %s1738_s13 = sld [smem:[%s825_s24 + %s2295_s17]]  ;;  %s300_s0 = scalar_lea.hbm %s2219_s1, %s777_s28 }
  0x74   : > { %s1019_s12 = scalar_lea.hbm %s300_s0, 16  ;;  %p1024_p3 = scmp.lt.u32.totalorder %s300_s0, %s2219_s1 }
  0x75   : > { %p1020_p8 = scmp.ne.s32.totalorder %s300_s0, %s1019_s12  ;;  %p1025_p4 = scmp.lt.u32.totalorder %s1683_s27, %s1019_s12 }
  0x76   : > { %p1027_p7 = scmp.lt.u32.totalorder %s1019_s12, %s300_s0 }
  0x77   : > { %p1021_p13 = pnand %p1020_p8, %p871_p5  ;;  %p1026_p6 = por %p1025_p4, %p1024_p3 }
  0x79   : > { %p1022_p1 = pneg %p1021_p13  ;;  %p1028_p10 = por %p1027_p7, %p1026_p6 }
  0x7b   : > { %p1029_p11 = pnand %p1028_p10, %p1022_p1 }
  0x7d   : > { %1032 = shalt.err (!%p1029_p11)  }
  0x7e   : > { %s1033_s15 = scalar_lea.vmem %s1707_s26, 16  ;;  %p1040_p2 = scmp.lt.s32.totalorder %s1707_s26, %s1659_s16 }
  0x7f   : > { %p1034_p12 = scmp.ne.s32.totalorder %s1707_s26, %s1033_s15  ;;  %p1041_p8 = scmp.lt.s32.totalorder %s1694_s10, %s1033_s15 }
  0x81   : > { %p1035_p9 = pnand %p1034_p12, %p871_p5  ;;  %p1042_p13 = por %p1041_p8, %p1040_p2 }
  0x83   : > { %p1036_p0 = pneg %p1035_p9 }
  0x85   : > { %p1043_p3 = pnand %p1042_p13, %p1036_p0 }
  0x87   : > { %1046 = shalt.err (!%p1043_p3)  }
  0x88   : > { %824 = dma.hbm_to_vmem [thread:$0]  (%p871_p5), %s300_s0, 16, %s1707_s26, [#allocation3] }
  0x89   : > { %s828_s12 = scalar_select %p871_p5, [#allocation5], [#allocation46] }
  0x8a   : > { %s2297_s23 = smov (!%p871_p5, %s329_s23), 0  ;;  %s345_s17 = sadd.s32 5, %s1647_s14 }
  0x8b   : > { %s778_s24 = sshll.u32 %s1738_s13, 4  ;;  %s1767_s29 = sld [smem:[%s828_s12 + %s2297_s23]] }
  0x8c   : > { %s316_s4 = scalar_lea.hbm %s2219_s1, %s778_s24  ;;  %s1516_s20 = smov [#allocation2 + $0x4]  }
  0x8d   : > { %s341_s21 = sshll.u32 %s1516_s20, 4  ;;  %s1047_s15 = scalar_lea.hbm %s316_s4, 16  ;;  %s342_s21 = int_to_ptr.vmem [resolvable:$true] %s341_s21 }
  0x8e   : > { %p1048_p1 = scmp.ne.s32.totalorder %s316_s4, %s1047_s15  ;;  %p1052_p7 = scmp.lt.u32.totalorder %s316_s4, %s2219_s1 }
  0x8f   : > { %p1053_p10 = scmp.lt.u32.totalorder %s1683_s27, %s1047_s15  ;;  %p1055_p12 = scmp.lt.u32.totalorder %s1047_s15, %s316_s4 }
  0x90   : > { %p1049_p4 = pnand %p1048_p1, %p871_p5 }
  0x91   : > { %p1054_p11 = por %p1053_p10, %p1052_p7 }
  0x92   : > { %p1050_p6 = pneg %p1049_p4 }
  0x93   : > { %p1056_p9 = por %p1055_p12, %p1054_p11 }
  0x95   : > { %p1057_p0 = pnand %p1056_p9, %p1050_p6 }
  0x97   : > { %1060 = shalt.err (!%p1057_p0)  }
  0x98   : > { %s1061_s23 = scalar_lea.vmem %s1743_s19, 16  ;;  %p1068_p3 = scmp.lt.s32.totalorder %s1743_s19, %s1659_s16 }
  0x99   : > { %p1062_p2 = scmp.ne.s32.totalorder %s1743_s19, %s1061_s23  ;;  %p1069_p1 = scmp.lt.s32.totalorder %s1694_s10, %s1061_s23 }
  0x9b   : > { %p1063_p8 = pnand %p1062_p2, %p871_p5  ;;  %p1070_p4 = por %p1069_p1, %p1068_p3 }
  0x9d   : > { %p1064_p13 = pneg %p1063_p8 }
  0x9f   : > { %p1071_p7 = pnand %p1070_p4, %p1064_p13 }
  0xa1   : > { %1074 = shalt.err (!%p1071_p7)  }
  0xa2   : > { %827 = dma.hbm_to_vmem [thread:$0]  (%p871_p5), %s316_s4, 16, %s1743_s19, [#allocation3] }
  0xa3   : > { %s831_s13 = scalar_select %p871_p5, [#allocation5], [#allocation47] }
  0xa4   : > { %s2299_s17 = smov (!%p871_p5, %s345_s17), 0  ;;  %s779_s12 = sshll.u32 %s1767_s29, 4 }
  0xa5   : > { %s1517_s24 = smov [#allocation2 + $0x5]   ;;  %s332_s15 = scalar_lea.hbm %s2219_s1, %s779_s12 }
  0xa6   : > { %s357_s28 = sshll.u32 %s1517_s24, 4  ;;  %s1796_s26 = sld [smem:[%s831_s13 + %s2299_s17]]  ;;  %s1810_s28 = int_to_ptr.vmem [resolvable:$true] %s357_s28 }
  0xa7   : > { %s1075_s0 = scalar_lea.hbm %s332_s15, 16  ;;  %p1080_p12 = scmp.lt.u32.totalorder %s332_s15, %s2219_s1 }
  0xa8   : > { %p1076_p6 = scmp.ne.s32.totalorder %s332_s15, %s1075_s0  ;;  %p1081_p9 = scmp.lt.u32.totalorder %s1683_s27, %s1075_s0 }
  0xa9   : > { %p1083_p2 = scmp.lt.u32.totalorder %s1075_s0, %s332_s15 }
  0xaa   : > { %p1077_p10 = pnand %p1076_p6, %p871_p5  ;;  %p1082_p0 = por %p1081_p9, %p1080_p12 }
  0xac   : > { %p1078_p11 = pneg %p1077_p10  ;;  %p1084_p8 = por %p1083_p2, %p1082_p0 }
  0xae   : > { %p1085_p13 = pnand %p1084_p8, %p1078_p11 }
  0xb0   : > { %1088 = shalt.err (!%p1085_p13)  }
  0xb1   : > { %s1089_s29 = scalar_lea.vmem %s342_s21, 16  ;;  %p1096_p7 = scmp.lt.s32.totalorder %s342_s21, %s1659_s16 }
  0xb2   : > { %p1090_p3 = scmp.ne.s32.totalorder %s342_s21, %s1089_s29  ;;  %p1097_p6 = scmp.lt.s32.totalorder %s1694_s10, %s1089_s29 }
  0xb4   : > { %p1091_p1 = pnand %p1090_p3, %p871_p5  ;;  %p1098_p10 = por %p1097_p6, %p1096_p7 }
  0xb6   : > { %p1092_p4 = pneg %p1091_p1 }
  0xb8   : > { %p1099_p9 = pnand %p1098_p10, %p1092_p4 }
  0xba   : > { %1102 = shalt.err (!%p1099_p9)  }
  0xbb   : > { %830 = dma.hbm_to_vmem [thread:$0]  (%p871_p5), %s332_s15, 16, %s342_s21, [#allocation3] }
  0xbc   : > { %s361_s17 = sadd.s32 6, %s1647_s14  ;;  %s377_s13 = sadd.s32 7, %s1647_s14 }
  0xbd   : > { %s834_s23 = scalar_select %p871_p5, [#allocation5], [#allocation48] }
  0xbe   : > { %s2301_s17 = smov (!%p871_p5, %s361_s17), 0  ;;  %s780_s12 = sshll.u32 %s1796_s26, 4 }
  0xbf   : > { %s1819_s24 = sld [smem:[%s834_s23 + %s2301_s17]]  ;;  %s348_s0 = scalar_lea.hbm %s2219_s1, %s780_s12 }
  0xc0   : > { %s1518_s19 = smov [#allocation2 + $0x6]   ;;  %s1103_s29 = scalar_lea.hbm %s348_s0, 16 }
  0xc1   : > { %s373_s4 = sshll.u32 %s1518_s19, 4  ;;  %p1104_p11 = scmp.ne.s32.totalorder %s348_s0, %s1103_s29  ;;  %s374_s4 = int_to_ptr.vmem [resolvable:$true] %s373_s4 }
  0xc2   : > { %p1108_p2 = scmp.lt.u32.totalorder %s348_s0, %s2219_s1  ;;  %p1109_p8 = scmp.lt.u32.totalorder %s1683_s27, %s1103_s29 }
  0xc3   : > { %p1105_p12 = pnand %p1104_p11, %p871_p5  ;;  %p1111_p3 = scmp.lt.u32.totalorder %s1103_s29, %s348_s0 }
  0xc4   : > { %p1110_p13 = por %p1109_p8, %p1108_p2 }
  0xc5   : > { %p1106_p0 = pneg %p1105_p12 }
  0xc6   : > { %p1112_p1 = por %p1111_p3, %p1110_p13 }
  0xc8   : > { %p1113_p4 = pnand %p1112_p1, %p1106_p0 }
  0xca   : > { %1116 = shalt.err (!%p1113_p4)  }
  0xcb   : > { %s1117_s26 = scalar_lea.vmem %s1810_s28, 16  ;;  %p1124_p9 = scmp.lt.s32.totalorder %s1810_s28, %s1659_s16 }
  0xcc   : > { %p1118_p7 = scmp.ne.s32.totalorder %s1810_s28, %s1117_s26  ;;  %p1125_p11 = scmp.lt.s32.totalorder %s1694_s10, %s1117_s26 }
  0xce   : > { %p1119_p6 = pnand %p1118_p7, %p871_p5  ;;  %p1126_p12 = por %p1125_p11, %p1124_p9 }
  0xd0   : > { %p1120_p10 = pneg %p1119_p6 }
  0xd2   : > { %p1127_p2 = pnand %p1126_p12, %p1120_p10 }
  0xd4   : > { %1130 = shalt.err (!%p1127_p2)  }
  0xd5   : > { %833 = dma.hbm_to_vmem [thread:$0]  (%p871_p5), %s348_s0, 16, %s1810_s28, [#allocation3] }
  0xd6   : > { %s837_s17 = scalar_select %p871_p5, [#allocation5], [#allocation49] }
  0xd7   : > { %s2303_s13 = smov (!%p871_p5, %s377_s13), 0  ;;  %s781_s23 = sshll.u32 %s1819_s24, 4 }
  0xd8   : > { %s1519_s12 = smov [#allocation2 + $0x7]   ;;  %s364_s29 = scalar_lea.hbm %s2219_s1, %s781_s23 }
  0xd9   : > { %s389_s11 = sshll.u32 %s1519_s12, 4  ;;  %s1848_s21 = sld [smem:[%s837_s17 + %s2303_s13]]  ;;  %s1862_s11 = int_to_ptr.vmem [resolvable:$true] %s389_s11 }
  0xda   : > { %s1131_s15 = scalar_lea.hbm %s364_s29, 16  ;;  %p1136_p3 = scmp.lt.u32.totalorder %s364_s29, %s2219_s1 }
  0xdb   : > { %p1132_p0 = scmp.ne.s32.totalorder %s364_s29, %s1131_s15  ;;  %p1137_p1 = scmp.lt.u32.totalorder %s1683_s27, %s1131_s15 }
  0xdc   : > { %p1139_p7 = scmp.lt.u32.totalorder %s1131_s15, %s364_s29 }
  0xdd   : > { %p1133_p8 = pnand %p1132_p0, %p871_p5  ;;  %p1138_p4 = por %p1137_p1, %p1136_p3 }
  0xdf   : > { %p1134_p13 = pneg %p1133_p8  ;;  %p1140_p6 = por %p1139_p7, %p1138_p4 }
  0xe1   : > { %p1141_p10 = pnand %p1140_p6, %p1134_p13 }
  0xe3   : > { %1144 = shalt.err (!%p1141_p10)  }
  0xe4   : > { %s1145_s24 = scalar_lea.vmem %s374_s4, 16  ;;  %p1152_p2 = scmp.lt.s32.totalorder %s374_s4, %s1659_s16 }
  0xe5   : > { %p1146_p9 = scmp.ne.s32.totalorder %s374_s4, %s1145_s24  ;;  %p1153_p0 = scmp.lt.s32.totalorder %s1694_s10, %s1145_s24 }
  0xe7   : > { %p1147_p11 = pnand %p1146_p9, %p871_p5  ;;  %p1154_p8 = por %p1153_p0, %p1152_p2 }
  0xe9   : > { %p1148_p12 = pneg %p1147_p11 }
  0xeb   : > { %p1155_p1 = pnand %p1154_p8, %p1148_p12 }
  0xed   : > { %1158 = shalt.err (!%p1155_p1)  }
  0xee   : > { %836 = dma.hbm_to_vmem [thread:$0]  (%p871_p5), %s364_s29, 16, %s374_s4, [#allocation3] }
  0xef   : > { %s257_s13 = ssub.s32 0, %s1493_s8  ;;  %s393_s26 = sadd.s32 1, %s1493_s8 }
  0xf0   : > { %s1868_s17 = smin.u32 %s1493_s8, %s257_s13  ;;  %p1871_p3 = scmp.lt.s32.totalorder %s393_s26, 2 }
  0xf1   : > { %s259_s23 = sand.u32 1, %s1868_s17   ;;  %s782_s20 = sshll.u32 %s1848_s21, 4 }
  0xf2   : > { %s2260_s12 = scalar_select %p1871_p3, 1, 0 }
  0xf3   : > { %s260_s19 = ssub.s32 0, %s259_s23  ;;  %s380_s4 = scalar_lea.hbm %s2219_s1, %s782_s20 }
  0xf4   : > { %s2238_s29 = sshll.u32 %s1493_s8, 3  ;;  %s1159_s0 = scalar_lea.hbm %s380_s4, 16 }
  0xf5   : > { %p1160_p4 = scmp.ne.s32.totalorder %s380_s4, %s1159_s0  ;;  %p1164_p10 = scmp.lt.u32.totalorder %s380_s4, %s2219_s1 }
  0xf6   : > { %p1165_p9 = scmp.lt.u32.totalorder %s1683_s27, %s1159_s0  ;;  %p1167_p12 = scmp.lt.u32.totalorder %s1159_s0, %s380_s4 }
  0xf7   : > { %p1161_p7 = pnand %p1160_p4, %p871_p5 }
  0xf8   : > { %p1166_p11 = por %p1165_p9, %p1164_p10 }
  0xf9   : > { %p1162_p6 = pneg %p1161_p7 }
  0xfa   : > { %p1168_p2 = por %p1167_p12, %p1166_p11 }
  0xfc   : > { %p1169_p0 = pnand %p1168_p2, %p1162_p6 }
  0xfe   : > { %1172 = shalt.err (!%p1169_p0)  }
  0xff   : > { %s1173_s21 = scalar_lea.vmem %s1862_s11, 16  ;;  %p1180_p7 = scmp.lt.s32.totalorder %s1862_s11, %s1659_s16 }
 0x100   : > { %p1174_p8 = scmp.ne.s32.totalorder %s1862_s11, %s1173_s21  ;;  %p1181_p13 = scmp.lt.s32.totalorder %s1694_s10, %s1173_s21 }
 0x102   : > { %p1175_p1 = pnand %p1174_p8, %p871_p5  ;;  %p1182_p3 = por %p1181_p13, %p1180_p7 }
 0x104   : > { %p1176_p4 = pneg %p1175_p1 }
 0x106   : > { %p1183_p9 = pnand %p1182_p3, %p1176_p4 }
 0x108   : > { %1186 = shalt.err (!%p1183_p9)  }
 0x109   : > { %839 = dma.hbm_to_vmem [thread:$0]  (%p871_p5), %s380_s4, 16, %s1862_s11, [#allocation3] }
 0x10a   : > { %p2261_p6 = scmp.lt.s32.totalorder %s1493_s8, 0  ;;  %s814_s26 = sadd.s32 8, %s2238_s29 }
 0x10b   : > { %s1904_s20 = sadd.s32 %s814_s26, %s1647_s14  ;;  %p2262_p13 = scmp.ne.s32.totalorder %s2260_s12, 0 }
 0x10c   : > { %s2305_s19 = smov (!%p2261_p6, %s260_s19), %s259_s23  ;;  %s419_s14 = sadd.s32 1, %s1904_s20 }
 0x10d   : > { %s398_s17 = ssub.s32 1, %s2305_s19  ;;  %s2307_s14 = smov (!%p2262_p13, %s419_s14), 0 }
 0x10e   : > { %s841_s15 = scalar_select %p2262_p13, [#allocation5], [#allocation50] }
 0x10f   : > { %s842_s28 = scalar_select %p2262_p13, %s1904_s20, 0 }
 0x110   : > { %s787_s0 = sshll.u32 %s398_s17, 3 }
 0x111   : > { %s402_s24 = sld [smem:[%s841_s15 + %s842_s28]]  ;;  %s1911_s11 = scalar_lea.vmem [#allocation2], %s787_s0 }
 0x112   : > { %s415_s23 = sshll.u32 %s1911_s11, 4  ;;  %s686_s26 = scalar_lea.vmem %s1911_s11, 1 [#allocation2]  ;;  %s1915_s23 = int_to_ptr.vmem [resolvable:$true] %s415_s23 }
 0x113   : > { %s844_s13 = scalar_select %p2262_p13, [#allocation5], [#allocation51] }
 0x114   : > { %s1928_s0 = scalar_lea.sflag [#allocation3], %s398_s17 }
 0x115   : > { %s1926_s28 = sld [smem:[%s844_s13 + %s2307_s14]] }
 0x117   : > { %s786_s21 = sshll.u32 %s402_s24, 4 }
 0x118   : > { %s404_s15 = scalar_lea.hbm %s2219_s1, %s786_s21 }
 0x119   : > { %s1187_s6 = scalar_lea.hbm %s404_s15, 16  ;;  %p1192_p11 = scmp.lt.u32.totalorder %s404_s15, %s2219_s1 }
 0x11a   : > { %p1188_p5 = scmp.ne.s32.totalorder %s404_s15, %s1187_s6  ;;  %p1193_p12 = scmp.lt.u32.totalorder %s1683_s27, %s1187_s6 }
 0x11b   : > { %p1195_p0 = scmp.lt.u32.totalorder %s1187_s6, %s404_s15 }
 0x11c   : > { %p1189_p3 = pnand %p1188_p5, %p2262_p13  ;;  %p1194_p2 = por %p1193_p12, %p1192_p11 }
 0x11e   : > { %p1190_p10 = pneg %p1189_p3  ;;  %p1196_p8 = por %p1195_p0, %p1194_p2 }
 0x120   : > { %p1197_p1 = pnand %p1196_p8, %p1190_p10 }
 0x122   : > { %1200 = shalt.err (!%p1197_p1)  }
 0x123   : > { %s1201_s7 = scalar_lea.vmem %s1915_s23, 16  ;;  %p1208_p6 = scmp.lt.s32.totalorder %s1915_s23, %s1659_s16 }
 0x124   : > { %p1202_p4 = scmp.ne.s32.totalorder %s1915_s23, %s1201_s7  ;;  %p1209_p5 = scmp.lt.s32.totalorder %s1694_s10, %s1201_s7 }
 0x126   : > { %p1203_p7 = pnand %p1202_p4, %p2262_p13  ;;  %p1210_p3 = por %p1209_p5, %p1208_p6 }
 0x128   : > { %p1204_p9 = pneg %p1203_p7 }
 0x12a   : > { %p1211_p11 = pnand %p1210_p3, %p1204_p9 }
 0x12c   : > { %1214 = shalt.err (!%p1211_p11)  }
 0x12d   : > { %843 = dma.hbm_to_vmem [thread:$0]  (%p2262_p13), %s404_s15, 16, %s1915_s23, %s1928_s0 }
 0x12e   : > { %s432_s5 = sshll.u32 %s686_s26, 4  ;;  %s436_s6 = sadd.s32 2, %s1904_s20  ;;  %s1948_s5 = int_to_ptr.vmem [resolvable:$true] %s432_s5 }
 0x12f   : > { %s691_s29 = scalar_lea.vmem %s1911_s11, 2 [#allocation2]  ;;  %s2309_s6 = smov (!%p2262_p13, %s436_s6), 0 }
 0x130   : > { %s847_s17 = scalar_select %p2262_p13, [#allocation5], [#allocation52] }
 0x131   : > { %s788_s24 = sshll.u32 %s1926_s28, 4  ;;  %s449_s4 = sshll.u32 %s691_s29, 4  ;;  %s1978_s4 = int_to_ptr.vmem [resolvable:$true] %s449_s4 }
 0x132   : > { %s422_s21 = scalar_lea.hbm %s2219_s1, %s788_s24  ;;  %s1959_s7 = sld [smem:[%s847_s17 + %s2309_s6]] }
 0x133   : > { %s1215_s18 = scalar_lea.hbm %s422_s21, 16  ;;  %p1220_p0 = scmp.lt.u32.totalorder %s422_s21, %s2219_s1 }
 0x134   : > { %p1216_p10 = scmp.ne.s32.totalorder %s422_s21, %s1215_s18  ;;  %p1221_p8 = scmp.lt.u32.totalorder %s1683_s27, %s1215_s18 }
 0x135   : > { %p1223_p4 = scmp.lt.u32.totalorder %s1215_s18, %s422_s21 }
 0x136   : > { %p1217_p12 = pnand %p1216_p10, %p2262_p13  ;;  %p1222_p1 = por %p1221_p8, %p1220_p0 }
 0x138   : > { %p1218_p2 = pneg %p1217_p12  ;;  %p1224_p7 = por %p1223_p4, %p1222_p1 }
 0x13a   : > { %p1225_p9 = pnand %p1224_p7, %p1218_p2 }
 0x13c   : > { %1228 = shalt.err (!%p1225_p9)  }
 0x13d   : > { %s1229_s15 = scalar_lea.vmem %s1948_s5, 16  ;;  %p1236_p11 = scmp.lt.s32.totalorder %s1948_s5, %s1659_s16 }
 0x13e   : > { %p1230_p6 = scmp.ne.s32.totalorder %s1948_s5, %s1229_s15  ;;  %p1237_p10 = scmp.lt.s32.totalorder %s1694_s10, %s1229_s15 }
 0x140   : > { %p1231_p5 = pnand %p1230_p6, %p2262_p13  ;;  %p1238_p12 = por %p1237_p10, %p1236_p11 }
 0x142   : > { %p1232_p3 = pneg %p1231_p5 }
 0x144   : > { %p1239_p0 = pnand %p1238_p12, %p1232_p3 }
 0x146   : > { %1242 = shalt.err (!%p1239_p0)  }
 0x147   : > { %846 = dma.hbm_to_vmem [thread:$0]  (%p2262_p13), %s422_s21, 16, %s1948_s5, %s1928_s0 }
 0x148   : > { %s453_s18 = sadd.s32 3, %s1904_s20  ;;  %s696_s6 = scalar_lea.vmem %s1911_s11, 3 [#allocation2] }
 0x149   : > { %s850_s28 = scalar_select %p2262_p13, [#allocation5], [#allocation53] }
 0x14a   : > { %s2311_s18 = smov (!%p2262_p13, %s453_s18), 0  ;;  %s470_s29 = sadd.s32 4, %s1904_s20 }
 0x14b   : > { %s790_s17 = sshll.u32 %s1959_s7, 4  ;;  %s1988_s24 = sld [smem:[%s850_s28 + %s2311_s18]] }
 0x14c   : > { %s439_s23 = scalar_lea.hbm %s2219_s1, %s790_s17  ;;  %s466_s26 = sshll.u32 %s696_s6, 4  ;;  %s2010_s26 = int_to_ptr.vmem [resolvable:$true] %s466_s26 }
 0x14d   : > { %s1243_s15 = scalar_lea.hbm %s439_s23, 16  ;;  %p1248_p4 = scmp.lt.u32.totalorder %s439_s23, %s2219_s1 }
 0x14e   : > { %p1244_p2 = scmp.ne.s32.totalorder %s439_s23, %s1243_s15  ;;  %p1249_p7 = scmp.lt.u32.totalorder %s1683_s27, %s1243_s15 }
 0x14f   : > { %p1251_p6 = scmp.lt.u32.totalorder %s1243_s15, %s439_s23 }
 0x150   : > { %p1245_p8 = pnand %p1244_p2, %p2262_p13  ;;  %p1250_p9 = por %p1249_p7, %p1248_p4 }
 0x152   : > { %p1246_p1 = pneg %p1245_p8  ;;  %p1252_p5 = por %p1251_p6, %p1250_p9 }
 0x154   : > { %p1253_p3 = pnand %p1252_p5, %p1246_p1 }
 0x156   : > { %1256 = shalt.err (!%p1253_p3)  }
 0x157   : > { %s1257_s7 = scalar_lea.vmem %s1978_s4, 16  ;;  %p1264_p0 = scmp.lt.s32.totalorder %s1978_s4, %s1659_s16 }
 0x158   : > { %p1258_p11 = scmp.ne.s32.totalorder %s1978_s4, %s1257_s7  ;;  %p1265_p2 = scmp.lt.s32.totalorder %s1694_s10, %s1257_s7 }
 0x15a   : > { %p1259_p10 = pnand %p1258_p11, %p2262_p13  ;;  %p1266_p8 = por %p1265_p2, %p1264_p0 }
 0x15c   : > { %p1260_p12 = pneg %p1259_p10 }
 0x15e   : > { %p1267_p4 = pnand %p1266_p8, %p1260_p12 }
 0x160   : > { %1270 = shalt.err (!%p1267_p4)  }
 0x161   : > { %849 = dma.hbm_to_vmem [thread:$0]  (%p2262_p13), %s439_s23, 16, %s1978_s4, %s1928_s0 }
 0x162   : > { %s701_s18 = scalar_lea.vmem %s1911_s11, 4 [#allocation2]  ;;  %s2313_s29 = smov (!%p2262_p13, %s470_s29), 0 }
 0x163   : > { %s853_s28 = scalar_select %p2262_p13, [#allocation5], [#allocation54] }
 0x164   : > { %s792_s6 = sshll.u32 %s1988_s24, 4  ;;  %s483_s17 = sshll.u32 %s701_s18, 4  ;;  %s2040_s17 = int_to_ptr.vmem [resolvable:$true] %s483_s17 }
 0x165   : > { %s456_s15 = scalar_lea.hbm %s2219_s1, %s792_s6  ;;  %s2021_s5 = sld [smem:[%s853_s28 + %s2313_s29]] }
 0x166   : > { %s1271_s21 = scalar_lea.hbm %s456_s15, 16  ;;  %p1276_p6 = scmp.lt.u32.totalorder %s456_s15, %s2219_s1 }
 0x167   : > { %p1272_p1 = scmp.ne.s32.totalorder %s456_s15, %s1271_s21  ;;  %p1277_p5 = scmp.lt.u32.totalorder %s1683_s27, %s1271_s21 }
 0x168   : > { %p1279_p11 = scmp.lt.u32.totalorder %s1271_s21, %s456_s15 }
 0x169   : > { %p1273_p7 = pnand %p1272_p1, %p2262_p13  ;;  %p1278_p3 = por %p1277_p5, %p1276_p6 }
 0x16b   : > { %p1274_p9 = pneg %p1273_p7  ;;  %p1280_p10 = por %p1279_p11, %p1278_p3 }
 0x16d   : > { %p1281_p12 = pnand %p1280_p10, %p1274_p9 }
 0x16f   : > { %1284 = shalt.err (!%p1281_p12)  }
 0x170   : > { %s1285_s29 = scalar_lea.vmem %s2010_s26, 16  ;;  %p1292_p4 = scmp.lt.s32.totalorder %s2010_s26, %s1659_s16 }
 0x171   : > { %p1286_p0 = scmp.ne.s32.totalorder %s2010_s26, %s1285_s29  ;;  %p1293_p1 = scmp.lt.s32.totalorder %s1694_s10, %s1285_s29 }
 0x173   : > { %p1287_p2 = pnand %p1286_p0, %p2262_p13  ;;  %p1294_p7 = por %p1293_p1, %p1292_p4 }
 0x175   : > { %p1288_p8 = pneg %p1287_p2 }
 0x177   : > { %p1295_p5 = pnand %p1294_p7, %p1288_p8 }
 0x179   : > { %1298 = shalt.err (!%p1295_p5)  }
 0x17a   : > { %852 = dma.hbm_to_vmem [thread:$0]  (%p2262_p13), %s456_s15, 16, %s2010_s26, %s1928_s0 }
 0x17b   : > { %s487_s24 = sadd.s32 5, %s1904_s20  ;;  %s706_s18 = scalar_lea.vmem %s1911_s11, 5 [#allocation2] }
 0x17c   : > { %s856_s7 = scalar_select %p2262_p13, [#allocation5], [#allocation55] }
 0x17d   : > { %s2315_s24 = smov (!%p2262_p13, %s487_s24), 0  ;;  %s504_s28 = sadd.s32 6, %s1904_s20 }
 0x17e   : > { %s794_s6 = sshll.u32 %s2021_s5, 4  ;;  %s2050_s14 = sld [smem:[%s856_s7 + %s2315_s24]] }
 0x17f   : > { %s473_s4 = scalar_lea.hbm %s2219_s1, %s794_s6  ;;  %s500_s23 = sshll.u32 %s706_s18, 4  ;;  %s501_s23 = int_to_ptr.vmem [resolvable:$true] %s500_s23 }
 0x180   : > { %s1299_s29 = scalar_lea.hbm %s473_s4, 16  ;;  %p1304_p11 = scmp.lt.u32.totalorder %s473_s4, %s2219_s1 }
 0x181   : > { %p1300_p9 = scmp.ne.s32.totalorder %s473_s4, %s1299_s29  ;;  %p1305_p10 = scmp.lt.u32.totalorder %s1683_s27, %s1299_s29 }
 0x182   : > { %p1307_p0 = scmp.lt.u32.totalorder %s1299_s29, %s473_s4 }
 0x183   : > { %p1301_p6 = pnand %p1300_p9, %p2262_p13  ;;  %p1306_p12 = por %p1305_p10, %p1304_p11 }
 0x185   : > { %p1302_p3 = pneg %p1301_p6  ;;  %p1308_p2 = por %p1307_p0, %p1306_p12 }
 0x187   : > { %p1309_p8 = pnand %p1308_p2, %p1302_p3 }
 0x189   : > { %1312 = shalt.err (!%p1309_p8)  }
 0x18a   : > { %s1313_s5 = scalar_lea.vmem %s2040_s17, 16  ;;  %p1320_p5 = scmp.lt.s32.totalorder %s2040_s17, %s1659_s16 }
 0x18b   : > { %p1314_p4 = scmp.ne.s32.totalorder %s2040_s17, %s1313_s5  ;;  %p1321_p9 = scmp.lt.s32.totalorder %s1694_s10, %s1313_s5 }
 0x18d   : > { %p1315_p1 = pnand %p1314_p4, %p2262_p13  ;;  %p1322_p6 = por %p1321_p9, %p1320_p5 }
 0x18f   : > { %p1316_p7 = pneg %p1315_p1 }
 0x191   : > { %p1323_p10 = pnand %p1322_p6, %p1316_p7 }
 0x193   : > { %1326 = shalt.err (!%p1323_p10)  }
 0x194   : > { %855 = dma.hbm_to_vmem [thread:$0]  (%p2262_p13), %s473_s4, 16, %s2040_s17, %s1928_s0 }
 0x195   : > { %s859_s24 = scalar_select %p2262_p13, [#allocation5], [#allocation56] }
 0x196   : > { %s2317_s28 = smov (!%p2262_p13, %s504_s28), 0  ;;  %s796_s7 = sshll.u32 %s2050_s14, 4 }
 0x197   : > { %s711_s18 = scalar_lea.vmem %s1911_s11, 6 [#allocation2]  ;;  %s490_s21 = scalar_lea.hbm %s2219_s1, %s796_s7 }
 0x198   : > { %s2081_s29 = sld [smem:[%s859_s24 + %s2317_s28]]  ;;  %s1327_s26 = scalar_lea.hbm %s490_s21, 16 }
 0x199   : > { %p1328_p3 = scmp.ne.s32.totalorder %s490_s21, %s1327_s26  ;;  %p1332_p0 = scmp.lt.u32.totalorder %s490_s21, %s2219_s1 }
 0x19a   : > { %p1333_p2 = scmp.lt.u32.totalorder %s1683_s27, %s1327_s26  ;;  %p1335_p4 = scmp.lt.u32.totalorder %s1327_s26, %s490_s21 }
 0x19b   : > { %p1329_p11 = pnand %p1328_p3, %p2262_p13 }
 0x19c   : > { %p1334_p8 = por %p1333_p2, %p1332_p0 }
 0x19d   : > { %p1330_p12 = pneg %p1329_p11 }
 0x19e   : > { %p1336_p1 = por %p1335_p4, %p1334_p8 }
 0x1a0   : > { %p1337_p7 = pnand %p1336_p1, %p1330_p12 }
 0x1a2   : > { %1340 = shalt.err (!%p1337_p7)  }
 0x1a3   : > { %s1341_s14 = scalar_lea.vmem %s501_s23, 16  ;;  %p1348_p10 = scmp.lt.s32.totalorder %s501_s23, %s1659_s16 }
 0x1a4   : > { %p1342_p5 = scmp.ne.s32.totalorder %s501_s23, %s1341_s14  ;;  %p1349_p3 = scmp.lt.s32.totalorder %s1694_s10, %s1341_s14 }
 0x1a6   : > { %p1343_p9 = pnand %p1342_p5, %p2262_p13  ;;  %p1350_p11 = por %p1349_p3, %p1348_p10 }
 0x1a8   : > { %p1344_p6 = pneg %p1343_p9 }
 0x1aa   : > { %p1351_p0 = pnand %p1350_p11, %p1344_p6 }
 0x1ac   : > { %1354 = shalt.err (!%p1351_p0)  }
 0x1ad   : > { %858 = dma.hbm_to_vmem [thread:$0]  (%p2262_p13), %s490_s21, 16, %s501_s23, %s1928_s0 }
 0x1ae   : > { %s517_s28 = sshll.u32 %s711_s18, 4  ;;  %s521_s4 = sadd.s32 7, %s1904_s20  ;;  %s518_s28 = int_to_ptr.vmem [resolvable:$true] %s517_s28 }
 0x1af   : > { %s862_s5 = scalar_select %p2262_p13, [#allocation5], [#allocation57] }
 0x1b0   : > { %s2319_s4 = smov (!%p2262_p13, %s521_s4), 0  ;;  %s716_s24 = scalar_lea.vmem %s1911_s11, 7 [#allocation2] }
 0x1b1   : > { %s798_s7 = sshll.u32 %s2081_s29, 4  ;;  %s522_s6 = sld [smem:[%s862_s5 + %s2319_s4]] }
 0x1b2   : > { %s507_s15 = scalar_lea.hbm %s2219_s1, %s798_s7  ;;  %s534_s17 = sshll.u32 %s716_s24, 4  ;;  %s535_s17 = int_to_ptr.vmem [resolvable:$true] %s534_s17 }
 0x1b3   : > { %s1355_s14 = scalar_lea.hbm %s507_s15, 16  ;;  %p1360_p4 = scmp.lt.u32.totalorder %s507_s15, %s2219_s1 }
 0x1b4   : > { %p1356_p12 = scmp.ne.s32.totalorder %s507_s15, %s1355_s14  ;;  %p1361_p1 = scmp.lt.u32.totalorder %s1683_s27, %s1355_s14 }
 0x1b5   : > { %p1363_p5 = scmp.lt.u32.totalorder %s1355_s14, %s507_s15 }
 0x1b6   : > { %p1357_p2 = pnand %p1356_p12, %p2262_p13  ;;  %p1362_p7 = por %p1361_p1, %p1360_p4 }
 0x1b8   : > { %p1358_p8 = pneg %p1357_p2  ;;  %p1364_p9 = por %p1363_p5, %p1362_p7 }
 0x1ba   : > { %p1365_p6 = pnand %p1364_p9, %p1358_p8 }
 0x1bc   : > { %1368 = shalt.err (!%p1365_p6)  }
 0x1bd   : > { %s1369_s11 = scalar_lea.vmem %s518_s28, 16  ;;  %p1376_p0 = scmp.lt.s32.totalorder %s518_s28, %s1659_s16 }
 0x1be   : > { %p1370_p10 = scmp.ne.s32.totalorder %s518_s28, %s1369_s11  ;;  %p1377_p12 = scmp.lt.s32.totalorder %s1694_s10, %s1369_s11 }
 0x1c0   : > { %p1371_p3 = pnand %p1370_p10, %p2262_p13  ;;  %p1378_p2 = por %p1377_p12, %p1376_p0 }
 0x1c2   : > { %p1372_p11 = pneg %p1371_p3 }
 0x1c4   : > { %p1379_p1 = pnand %p1378_p2, %p1372_p11 }
 0x1c6   : > { %1382 = shalt.err (!%p1379_p1)  }
 0x1c7   : > { %861 = dma.hbm_to_vmem [thread:$0]  (%p2262_p13), %s507_s15, 16, %s518_s28, %s1928_s0 }
 0x1c8   : > { %s800_s18 = sshll.u32 %s522_s6, 4 }
 0x1c9   : > { %s524_s4 = scalar_lea.hbm %s2219_s1, %s800_s18 }
 0x1ca   : > { %s1383_s5 = scalar_lea.hbm %s524_s4, 16  ;;  %p1388_p5 = scmp.lt.u32.totalorder %s524_s4, %s2219_s1 }
 0x1cb   : > { %p1384_p8 = scmp.ne.s32.totalorder %s524_s4, %s1383_s5  ;;  %p1389_p9 = scmp.lt.u32.totalorder %s1683_s27, %s1383_s5 }
 0x1cc   : > { %p1391_p10 = scmp.lt.u32.totalorder %s1383_s5, %s524_s4 }
 0x1cd   : > { %p1385_p4 = pnand %p1384_p8, %p2262_p13  ;;  %p1390_p6 = por %p1389_p9, %p1388_p5 }
 0x1cf   : > { %p1386_p7 = pneg %p1385_p4  ;;  %p1392_p3 = por %p1391_p10, %p1390_p6 }
 0x1d1   : > { %p1393_p11 = pnand %p1392_p3, %p1386_p7 }
 0x1d3   : > { %1396 = shalt.err (!%p1393_p11)  }
 0x1d4   : > { %s1397_s28 = scalar_lea.vmem %s535_s17, 16  ;;  %p1404_p1 = scmp.lt.s32.totalorder %s535_s17, %s1659_s16 }
 0x1d5   : > { %p1398_p0 = scmp.ne.s32.totalorder %s535_s17, %s1397_s28  ;;  %p1405_p8 = scmp.lt.s32.totalorder %s1694_s10, %s1397_s28 }
 0x1d7   : > { %p1399_p12 = pnand %p1398_p0, %p2262_p13  ;;  %p1406_p4 = por %p1405_p8, %p1404_p1 }
 0x1d9   : > { %p1400_p2 = pneg %p1399_p12 }
 0x1db   : > { %p1407_p5 = pnand %p1406_p4, %p1400_p2 }
 0x1dd   : > { %1410 = shalt.err (!%p1407_p5)  }
 0x1de   : > { %864 = dma.hbm_to_vmem [thread:$0]  (%p2262_p13), %s524_s4, 16, %s535_s17, %s1928_s0 }
 0x1df   : > { %s247_s27 = scalar_lea.vmem [#allocation6], %s1640_s25  ;;  %s2263_s6 = sshll.u32 %s2305_s19, 3 }
 0x1e0   : > { %s539_s13 = scalar_lea.vmem [#allocation2], %s2263_s6  ;;  %s540_s26 = scalar_lea.sflag [#allocation3], %s2305_s19 }
 0x1e1   : > { %1473 = dma.done.wait %s540_s26, 128 }
 0x1e2   : > { %1474 = vsyncadd %s540_s26, 4294967168  ;;  %v1520_v0 = vmov 0   ;;  %v548_v1 = vld [vmem:[%s1652_s22] sm:$0xff]  ;;  %v556_v3 = vlaneseq  ;;  %s2264_s12 = sshll.u32 %s1493_s8, 3  ;;  %s807_s22 = sshll.u32 %s1497_s9, 1 }
 0x1e3   : > { %948 = vset.pattern.permute.xlu0 %v1520_v0  ;;  %vm550_vm0 = vcmp.eq.s32.totalorder %v548_v1, 0  ;;  %v549_v7 = vld [vmem:[%s2220_s2] sm:$0x3]  ;;  %s546_s15 = scalar_lea.vmem %s2221_s3, %s2264_s12  ;;  %s2265_s17 = sld [smem:[#allocation67_spill]] }
 0x1e4   : > { %v551_v2 = vsel %vm550_vm0, 1, %v1520_v0  ;;  %v557_v4 = vshrl.u32 %v556_v3, 7  ;;  %v544_v11 = vld [vmem:[%s539_s13] sm:$0xff]  ;;  %s608_s14 = sadd.s32 %s1493_s8, %s807_s22  ;;  %s2266_s11 = sld [smem:[#allocation72_spill]] }
 0x1e5   : > { %553 = vperm.xlu0 %948, %v551_v2   ;;  %v547_v13 = vld [vmem:[%s546_s15] sm:$0xff]  ;;  %s2267_s29 = sld [smem:[#allocation73_spill]]  ;;  %s808_s4 = sshll.u32 %s608_s14, 7 }
 0x1e6   : > { %v558_v5 = vsub.s32 0, %v557_v4  ;;  %v562_v6 = vsub.s32 1, %v557_v4  ;;  %s612_s5 = sshll.u32 %s247_s27, 4  ;;  %s2268_s9 = sld [smem:[#allocation74_spill]]  ;;  %s2163_s5 = int_to_ptr.vmem [resolvable:$true] %s612_s5 }
 0x1e7   : > { %s2270_s8 = sand.u32 1, %s1485_s30   ;;  %s1411_s26 = scalar_lea.vmem %s2163_s5, 128 }
 0x1e8   : > { %v559_v8 = vrot.slane %v549_v7, %v558_v5  ;;  %v563_v9 = vrot.slane %v549_v7, %v562_v6  ;;  %s597_s13 = scalar_lea.sflag [#allocation7], %s2270_s8  ;;  %p1412_p13 = scmp.ne.s32.totalorder %s2163_s5, %s1411_s26 }
 0x1e9   : > { %p2271_p7 = scmp.ne.s32.totalorder %s2265_s17, 0  ;;  %s1521_s16 = smov [#allocation6]  }
 0x1ea   : > { %v804_v24 = vld [vmem:[%s2266_s11] ss:$0 sm:$0xff]  ;;  %s1415_s10 = sshll.u32 %s1521_s16, 4  ;;  %s1416_s10 = int_to_ptr.vmem [resolvable:$false] %s1415_s10 }
 0x1eb   : > { %v805_v26 = vld [vmem:[%s2267_s29] ss:$0 sm:$0xff]  ;;  %p1413_p9 = pnand %p1412_p13, %p2271_p7  ;;  %s1417_s12 = scalar_lea.vmem %s1416_s10, 256 }
 0x1ec   : > { %s2269_s28 = smov %s2268_s9  ;;  %s2161_s6 = scalar_lea.hbm %s2268_s9, %s808_s4 }
 0x1ed   : > { %p1414_p6 = pneg %p1413_p9  ;;  %p1418_p10 = scmp.lt.s32.totalorder %s2163_s5, %s1416_s10 }
 0x1ee   : > { %p1419_p3 = scmp.lt.s32.totalorder %s1417_s12, %s1411_s26 }
 0x1f0   : > { %p1420_p11 = por %p1419_p3, %p1418_p10 }
 0x1f2   : > { %p1421_p0 = pnand %p1420_p11, %p1414_p6 }
 0x264   : > { %v554_v10 = vpop.permute.xlu0 %553 }
 0x265   : > { %vm555_vm1 = vcmp.eq.s32.totalorder %v554_v10, 1 }
 0x266   : > { %v564_v12 = vsel %vm555_vm1, %v559_v8, %v563_v9 }
 0x267   : > { %v565_v14 = vadd.f32 %v564_v12, %v544_v11 }
 0x269   : > { %v566_v15 = vadd.f32 %v565_v14, %v547_v13 }
 0x26b   : > { %567 = vadd.xlane.f32.xlu0 %v566_v15 }
 0x2f8   : > { %v568_v16 = vpop.xlane.xlu0 %567 }
 0x2f9   : > { %v570_v17 = vmul.f32 0.0078125, %v568_v16 }
 0x2fb   : > { %v571_v18 = vsub.f32 %v566_v15, %v570_v17 }
 0x2fd   : > { %v572_v19 = vmul.f32 %v571_v18, %v571_v18 }
 0x2ff   : > { %573 = vadd.xlane.f32.xlu1 %v572_v19 }
 0x38c   : > { %v574_v20 = vpop.xlane.xlu1 %573 }
 0x38d   : > { %v575_v21 = vmul.f32 0.0078125, %v574_v20 }
 0x38f   : > { %v576_v22 = vadd.f32 1e-12, %v575_v21 }
 0x391   : > { %949 = vrsqrt.f32 %v576_v22 }
 0x39b   : > { %v950_v23 = vpop.eup %949 }
 0x39c   : > { %v578_v25 = vmul.f32 %v950_v23, %v571_v18 }
 0x39e   : > { %v586_v27 = vmul.f32 %v804_v24, %v578_v25 }
 0x3a0   : > { %v594_v28 = vadd.f32 %v805_v26, %v586_v27 }
 0x3a2   : > { %595 = vst [vmem:[%s247_s27] sm:$0xff] %v594_v28 }
 0x3a3   : > { %1424 = shalt.err (!%p1421_p0)
}
 0x3a4   : > { %s1425_s25 = scalar_lea.hbm %s2161_s6, 128  ;;  %s1429_s0 = scalar_lea.hbm %s2269_s28, 512 }
 0x3a5   : > { %p1426_p12 = scmp.ne.s32.totalorder %s2161_s6, %s1425_s25  ;;  %p1430_p8 = scmp.lt.u32.totalorder %s2161_s6, %s2269_s28 }
 0x3a6   : > { %p1431_p4 = scmp.lt.u32.totalorder %s1429_s0, %s1425_s25  ;;  %p1433_p13 = scmp.lt.u32.totalorder %s1425_s25, %s2161_s6 }
 0x3a7   : > { %p1427_p2 = pnand %p1426_p12, %p2271_p7 }
 0x3a8   : > { %p1432_p5 = por %p1431_p4, %p1430_p8 }
 0x3a9   : > { %p1428_p1 = pneg %p1427_p2 }
 0x3aa   : > { %p1434_p9 = por %p1433_p13, %p1432_p5 }
 0x3ac   : > { %p1435_p6 = pnand %p1434_p9, %p1428_p1 }
 0x3ae   : > { %1438 = shalt.err (!%p1435_p6)
}
 0x3af   : > { %865 = dma.vmem_to_hbm [thread:$0]  (%p2271_p7), %s2163_s5, 128, %s2161_s6, %s597_s13  }
 0x3b0 PF: > { %s2272_s14 = sld [smem:[#allocation65_spill]]  ;;  %s2273_s23 = sld [smem:[#allocation61_spill]] }
 0x3b1   : > { %s2274_s20 = sld [smem:[#allocation69_spill]] }
 0x3b6   : > { %p873_p10 = scmp.ge.s32.totalorder %s2272_s14, 2  ;;  %s624_s11 = sand.u32 1, %s2273_s23  }
 0x3b7   : > { %p2275_p3 = scmp.ne.s32.totalorder %s2274_s20, 0  ;;  %s625_s18 = scalar_lea.sflag [#allocation7], %s624_s11 }
 0x3b9   : > { %p868_p11 = pnand %p873_p10, %p2275_p3 }
 0x3bb   : > { %1476 = dma.done.wait (!%p868_p11), %s625_s18, 128  }
 0x3bc   : > { %1478 = vsyncadd (!%p868_p11), %s625_s18, 4294967168  ;;  %s26_s12 = sadd.s32 1, %s2272_s14   ;;  %s2276_s21 = sld [smem:[#allocation62_spill]] }
 0x3bd   : > { %p23_p0 = scmp.ge.s32.totalorder %s26_s12, 6   ;;  %s2277_s0 = sld [smem:[#allocation70_spill]] }
 0x3be   : > { %s2278_s8 = sld [smem:[#allocation63_spill]]  ;;  %s2279_s9 = sld [smem:[#allocation64_spill]] }
 0x3bf   : > { %s2280_s10 = sld [smem:[#allocation66_spill]]  ;;  %s2281_s11 = sld [smem:[#allocation68_spill]] }
 0x3c0   : > { %s2282_s29 = smov %s1485_s30  ;;  %25 = sbr.rel (!%p23_p0) target bundleno = 22 (0x16), region = 183 }
 0x3c2   : > { %s2283_s30 = smov %s2276_s21 }
 0x3c7   :  { %630 = vsyncpa [#allocation7], 1 }
 0x3c8   :  { %632 = vsyncpa [#allocation7 + $0x1], 1 }
 0x3c9   :  { %633 = vsyncmov [#allocation3] }
 0x3cc   :  { %s634_s17 = vpop.sfrf %633 }
 0x3cd   :  { %p811_p7 = scmp.ne.s32.totalorder %s634_s17, 0 }
 0x3cf   :  { %638 = shalt.err (%p811_p7)  }
 0x3d0   :  { %640 = vsyncmov [#allocation3 + $0x1] }
 0x3d3   :  { %s641_s4 = vpop.sfrf %640 }
 0x3d4   :  { %p812_p12 = scmp.ne.s32.totalorder %s641_s4, 0 }
 0x3d6   :  { %645 = shalt.err (%p812_p12)  }

</bundles_post_ra>
